<compile_context>
chip_gen: v6e
topology: v6e:2x2x1
jax: 0.10.0
libtpu: 0.0.40
codegen_flags: <defaults>
</compile_context>

<pallas_src>
import jax
import jax.numpy as jnp
from jax.experimental import pallas as pl
from jax.experimental.pallas import tpu as pltpu

LANE = 128
SUBLANE = 8


def _round_up(n, d):
    return ((n + d - 1) // d) * d


def _mlp_kernel(x_ref,
                w1_ref, b1_ref,
                w2_ref, b2_ref,
                w3_ref, b3_ref,
                w4_ref, b4_ref,
                w5_ref, b5_ref,
                o_ref):
    """One batch tile: 5 chained matmuls (MXU) + tanh (EUP), all in VMEM."""
    h = x_ref[...].astype(jnp.float32)

    def layer(h, w_ref, b_ref, activate):
        y = jnp.dot(h.astype(w_ref.dtype), w_ref[...],
                    preferred_element_type=jnp.float32) + b_ref[...]
        return jnp.tanh(y) if activate else y

    h = layer(h, w1_ref, b1_ref, True)
    h = layer(h, w2_ref, b2_ref, True)
    h = layer(h, w3_ref, b3_ref, True)
    h = layer(h, w4_ref, b4_ref, True)
    h = layer(h, w5_ref, b5_ref, False)

    o_ref[...] = h.astype(o_ref.dtype)


def init_params(key, in_N, m, out_N):
    """Deterministic PyTorch-style init; weights returned as (in, out), f32."""
    dims = [(in_N, m), (m, m), (m, m), (m, m), (m, out_N)]
    params = []
    for i, (fan_in, fan_out) in enumerate(dims):
        kw, kb = jax.random.split(jax.random.fold_in(key, i))
        bound = 1.0 / jnp.sqrt(fan_in)
        w = jax.random.uniform(kw, (fan_in, fan_out), jnp.float32, -bound, bound)
        b = jax.random.uniform(kb, (1, fan_out), jnp.float32, -bound, bound)
        params.append((w, b))
    return params


def prepare_params(params, weight_dtype=jnp.bfloat16):
    """Pad hidden/output widths to multiples of 128 and cast weights.

    Biases stay f32 (added to the f32 accumulator). Zero padding preserves
    the original NN1 math exactly.
    """
    (w1, b1), (w2, b2), (w3, b3), (w4, b4), (w5, b5) = params
    in_N, m = w1.shape
    out_N = w5.shape[1]
    m_pad = _round_up(m, LANE)
    out_pad = _round_up(out_N, LANE)

    def pad_w(w, rows, cols):
        return jnp.pad(w, ((0, rows - w.shape[0]),
                           (0, cols - w.shape[1]))).astype(weight_dtype)

    def pad_b(b, cols):
        return jnp.pad(b, ((0, 0), (0, cols - b.shape[1]))).astype(jnp.float32)

    return (
        (pad_w(w1, in_N, m_pad), pad_b(b1, m_pad)),
        (pad_w(w2, m_pad, m_pad), pad_b(b2, m_pad)),
        (pad_w(w3, m_pad, m_pad), pad_b(b3, m_pad)),
        (pad_w(w4, m_pad, m_pad), pad_b(b4, m_pad)),
        (pad_w(w5, m_pad, out_pad), pad_b(b5, out_pad)),
    )


def nn1_forward(x, prepared, out_N, tile_b=512):
    """Pallas forward pass. `prepared` comes from prepare_params()."""
    (w1, b1), (w2, b2), (w3, b3), (w4, b4), (w5, b5) = prepared
    batch, in_N = x.shape
    out_pad = w5.shape[1]

    # Batch tiling (sublane-aligned); pad a ragged batch so every block is full.
    tile_b = _round_up(min(tile_b, _round_up(batch, SUBLANE)), SUBLANE)
    batch_pad = _round_up(batch, tile_b)
    if batch_pad != batch:
        x = jnp.pad(x, ((0, batch_pad - batch), (0, 0)))
    grid = (batch_pad // tile_b,)

    def resident(shape):
        # Full-array block, constant block index -> VMEM-resident across steps.
        return pl.BlockSpec(shape, lambda b, _n=len(shape): (0,) * _n)

    in_specs = [
        pl.BlockSpec((tile_b, in_N), lambda b: (b, 0)),
        resident(w1.shape), resident(b1.shape),
        resident(w2.shape), resident(b2.shape),
        resident(w3.shape), resident(b3.shape),
        resident(w4.shape), resident(b4.shape),
        resident(w5.shape), resident(b5.shape),
    ]
    out_spec = pl.BlockSpec((tile_b, out_pad), lambda b: (b, 0))

    out = pl.pallas_call(
        _mlp_kernel,
        out_shape=jax.ShapeDtypeStruct((batch_pad, out_pad), jnp.float32),
        grid=grid,
        in_specs=in_specs,
        out_specs=out_spec,
        compiler_params=pltpu.CompilerParams(
            dimension_semantics=("parallel",),   # megacore sharding on v7x
            vmem_limit_bytes=32 * 1024 * 1024,   # explicit headroom, << physical
        ),
    )(x, w1, b1, w2, b2, w3, b3, w4, b4, w5, b5)

    return out[:batch, :out_N]


def nn1_reference(x, params, weight_dtype=jnp.bfloat16):
    """Pure-JAX reference mirroring the kernel's dtype strategy."""
    h = x.astype(jnp.float32)
    n = len(params)
    for i, (w, b) in enumerate(params):
        y = jnp.dot(h.astype(weight_dtype), w.astype(weight_dtype),
                    preferred_element_type=jnp.float32) + b.astype(jnp.float32)
        h = jnp.tanh(y) if i < n - 1 else y
    return h


if __name__ == "__main__":
    key = jax.random.PRNGKey(0)
    in_N, m, out_N = 2, 32, 1
    batch = 1024            # several grid steps at tile_b=256 to exercise pipelining

    params = init_params(key, in_N, m, out_N)
    prepared = prepare_params(params)          # bf16, lane-padded, done once
    x = jax.random.normal(jax.random.fold_in(key, 100), (batch, in_N), jnp.float32)

    out = nn1_forward(x, prepared, out_N, tile_b=256)
    out = jax.block_until_ready(out)

    ref = nn1_reference(x, params)
    assert out.shape == (batch, out_N)
    max_err = float(jnp.max(jnp.abs(out - ref)))
    assert jnp.allclose(out, ref, atol=2e-3, rtol=2e-3), f"mismatch vs reference: {max_err}"

    print("KERNEL_OK")
</pallas_src>

<mosaic_0001>
module attributes {stable_mosaic.version = 11 : i64} {
  func.func @_mlp_kernel(%arg0: i32, %arg1: memref<256x2xf32, #tpu.memory_space<vmem>>, %arg2: memref<2x128xbf16, #tpu.memory_space<vmem>>, %arg3: memref<1x128xf32, #tpu.memory_space<vmem>>, %arg4: memref<128x128xbf16, #tpu.memory_space<vmem>>, %arg5: memref<1x128xf32, #tpu.memory_space<vmem>>, %arg6: memref<128x128xbf16, #tpu.memory_space<vmem>>, %arg7: memref<1x128xf32, #tpu.memory_space<vmem>>, %arg8: memref<128x128xbf16, #tpu.memory_space<vmem>>, %arg9: memref<1x128xf32, #tpu.memory_space<vmem>>, %arg10: memref<128x128xbf16, #tpu.memory_space<vmem>>, %arg11: memref<1x128xf32, #tpu.memory_space<vmem>>, %arg12: memref<256x128xf32, #tpu.memory_space<vmem>>) attributes {dimension_semantics = [#tpu.dimension_semantics<parallel>], iteration_bounds = array<i64: 4>, scalar_prefetch = 0 : i64, scratch_operands = 0 : i64, tpu.core_type = #tpu.core_type<tc>, window_params = [{transform_indices = @transform_0, window_bounds = array<i64: 256, 2>}, {pipeline_mode = #tpu.pipeline_mode<synchronous>, transform_indices = @transform_1, window_bounds = array<i64: 2, 128>}, {pipeline_mode = #tpu.pipeline_mode<synchronous>, transform_indices = @transform_2, window_bounds = array<i64: 1, 128>}, {pipeline_mode = #tpu.pipeline_mode<synchronous>, transform_indices = @transform_3, window_bounds = array<i64: 128, 128>}, {pipeline_mode = #tpu.pipeline_mode<synchronous>, transform_indices = @transform_4, window_bounds = array<i64: 1, 128>}, {pipeline_mode = #tpu.pipeline_mode<synchronous>, transform_indices = @transform_5, window_bounds = array<i64: 128, 128>}, {pipeline_mode = #tpu.pipeline_mode<synchronous>, transform_indices = @transform_6, window_bounds = array<i64: 1, 128>}, {pipeline_mode = #tpu.pipeline_mode<synchronous>, transform_indices = @transform_7, window_bounds = array<i64: 128, 128>}, {pipeline_mode = #tpu.pipeline_mode<synchronous>, transform_indices = @transform_8, window_bounds = array<i64: 1, 128>}, {pipeline_mode = #tpu.pipeline_mode<synchronous>, transform_indices = @transform_9, window_bounds = array<i64: 128, 128>}, {pipeline_mode = #tpu.pipeline_mode<synchronous>, transform_indices = @transform_10, window_bounds = array<i64: 1, 128>}, {transform_indices = @transform_11, window_bounds = array<i64: 256, 128>}]} {
    %c0 = arith.constant 0 : index
    %c0_0 = arith.constant 0 : index
    %0 = vector.load %arg1[%c0, %c0_0] : memref<256x2xf32, #tpu.memory_space<vmem>>, vector<256x2xf32>
    %1 = arith.truncf %0 : vector<256x2xf32> to vector<256x2xbf16>
    %c0_1 = arith.constant 0 : index
    %c0_2 = arith.constant 0 : index
    %2 = vector.load %arg2[%c0_1, %c0_2] : memref<2x128xbf16, #tpu.memory_space<vmem>>, vector<2x128xbf16>
    %cst = arith.constant dense<0.000000e+00> : vector<256x128xf32>
    %3 = tpu.matmul %1, %2, %cst {dimension_numbers = #tpu.dot_dimension_numbers<[1], [0], [0], [1], [0, 0, 1, 1], [], []>} : vector<256x2xbf16>, vector<2x128xbf16>, vector<256x128xf32> -> vector<256x128xf32>
    %c0_3 = arith.constant 0 : index
    %c0_4 = arith.constant 0 : index
    %4 = vector.load %arg3[%c0_3, %c0_4] : memref<1x128xf32, #tpu.memory_space<vmem>>, vector<1x128xf32>
    %5 = vector.broadcast %4 : vector<1x128xf32> to vector<256x128xf32>
    %6 = arith.addf %3, %5 : vector<256x128xf32>
    %7 = math.tanh %6 : vector<256x128xf32>
    %8 = arith.truncf %7 : vector<256x128xf32> to vector<256x128xbf16>
    %c0_5 = arith.constant 0 : index
    %c0_6 = arith.constant 0 : index
    %9 = vector.load %arg4[%c0_5, %c0_6] : memref<128x128xbf16, #tpu.memory_space<vmem>>, vector<128x128xbf16>
    %cst_7 = arith.constant dense<0.000000e+00> : vector<256x128xf32>
    %10 = tpu.matmul %8, %9, %cst_7 {dimension_numbers = #tpu.dot_dimension_numbers<[1], [0], [0], [1], [0, 0, 1, 1], [], []>} : vector<256x128xbf16>, vector<128x128xbf16>, vector<256x128xf32> -> vector<256x128xf32>
    %c0_8 = arith.constant 0 : index
    %c0_9 = arith.constant 0 : index
    %11 = vector.load %arg5[%c0_8, %c0_9] : memref<1x128xf32, #tpu.memory_space<vmem>>, vector<1x128xf32>
    %12 = vector.broadcast %11 : vector<1x128xf32> to vector<256x128xf32>
    %13 = arith.addf %10, %12 : vector<256x128xf32>
    %14 = math.tanh %13 : vector<256x128xf32>
    %15 = arith.truncf %14 : vector<256x128xf32> to vector<256x128xbf16>
    %c0_10 = arith.constant 0 : index
    %c0_11 = arith.constant 0 : index
    %16 = vector.load %arg6[%c0_10, %c0_11] : memref<128x128xbf16, #tpu.memory_space<vmem>>, vector<128x128xbf16>
    %cst_12 = arith.constant dense<0.000000e+00> : vector<256x128xf32>
    %17 = tpu.matmul %15, %16, %cst_12 {dimension_numbers = #tpu.dot_dimension_numbers<[1], [0], [0], [1], [0, 0, 1, 1], [], []>} : vector<256x128xbf16>, vector<128x128xbf16>, vector<256x128xf32> -> vector<256x128xf32>
    %c0_13 = arith.constant 0 : index
    %c0_14 = arith.constant 0 : index
    %18 = vector.load %arg7[%c0_13, %c0_14] : memref<1x128xf32, #tpu.memory_space<vmem>>, vector<1x128xf32>
    %19 = vector.broadcast %18 : vector<1x128xf32> to vector<256x128xf32>
    %20 = arith.addf %17, %19 : vector<256x128xf32>
    %21 = math.tanh %20 : vector<256x128xf32>
    %22 = arith.truncf %21 : vector<256x128xf32> to vector<256x128xbf16>
    %c0_15 = arith.constant 0 : index
    %c0_16 = arith.constant 0 : index
    %23 = vector.load %arg8[%c0_15, %c0_16] : memref<128x128xbf16, #tpu.memory_space<vmem>>, vector<128x128xbf16>
    %cst_17 = arith.constant dense<0.000000e+00> : vector<256x128xf32>
    %24 = tpu.matmul %22, %23, %cst_17 {dimension_numbers = #tpu.dot_dimension_numbers<[1], [0], [0], [1], [0, 0, 1, 1], [], []>} : vector<256x128xbf16>, vector<128x128xbf16>, vector<256x128xf32> -> vector<256x128xf32>
    %c0_18 = arith.constant 0 : index
    %c0_19 = arith.constant 0 : index
    %25 = vector.load %arg9[%c0_18, %c0_19] : memref<1x128xf32, #tpu.memory_space<vmem>>, vector<1x128xf32>
    %26 = vector.broadcast %25 : vector<1x128xf32> to vector<256x128xf32>
    %27 = arith.addf %24, %26 : vector<256x128xf32>
    %28 = math.tanh %27 : vector<256x128xf32>
    %29 = arith.truncf %28 : vector<256x128xf32> to vector<256x128xbf16>
    %c0_20 = arith.constant 0 : index
    %c0_21 = arith.constant 0 : index
    %30 = vector.load %arg10[%c0_20, %c0_21] : memref<128x128xbf16, #tpu.memory_space<vmem>>, vector<128x128xbf16>
    %cst_22 = arith.constant dense<0.000000e+00> : vector<256x128xf32>
    %31 = tpu.matmul %29, %30, %cst_22 {dimension_numbers = #tpu.dot_dimension_numbers<[1], [0], [0], [1], [0, 0, 1, 1], [], []>} : vector<256x128xbf16>, vector<128x128xbf16>, vector<256x128xf32> -> vector<256x128xf32>
    %c0_23 = arith.constant 0 : index
    %c0_24 = arith.constant 0 : index
    %32 = vector.load %arg11[%c0_23, %c0_24] : memref<1x128xf32, #tpu.memory_space<vmem>>, vector<1x128xf32>
    %33 = vector.broadcast %32 : vector<1x128xf32> to vector<256x128xf32>
    %34 = arith.addf %31, %33 : vector<256x128xf32>
    %c0_25 = arith.constant 0 : index
    %c0_26 = arith.constant 0 : index
    %35 = vector.load %arg12[%c0_25, %c0_26] : memref<256x128xf32, #tpu.memory_space<vmem>>, vector<256x128xf32>
    tpu.vector_store %arg12[%c0_25, %c0_26], %34 {strides = array<i32>} : memref<256x128xf32, #tpu.memory_space<vmem>>, vector<256x128xf32>,
    return
  }
  func.func @transform_0(%arg0: i32) -> (i32, i32) {
    %c0_i32 = arith.constant 0 : i32
    %c0_i32_0 = arith.constant 0 : i32
    return %arg0, %c0_i32 : i32, i32
  }
  func.func @transform_1(%arg0: i32) -> (i32, i32) {
    %c0_i32 = arith.constant 0 : i32
    %c0_i32_0 = arith.constant 0 : i32
    %c0_i32_1 = arith.constant 0 : i32
    return %c0_i32, %c0_i32_0 : i32, i32
  }
  func.func @transform_2(%arg0: i32) -> (i32, i32) {
    %c0_i32 = arith.constant 0 : i32
    %c0_i32_0 = arith.constant 0 : i32
    %c0_i32_1 = arith.constant 0 : i32
    return %c0_i32, %c0_i32_0 : i32, i32
  }
  func.func @transform_3(%arg0: i32) -> (i32, i32) {
    %c0_i32 = arith.constant 0 : i32
    %c0_i32_0 = arith.constant 0 : i32
    %c0_i32_1 = arith.constant 0 : i32
    return %c0_i32, %c0_i32_0 : i32, i32
  }
  func.func @transform_4(%arg0: i32) -> (i32, i32) {
    %c0_i32 = arith.constant 0 : i32
    %c0_i32_0 = arith.constant 0 : i32
    %c0_i32_1 = arith.constant 0 : i32
    return %c0_i32, %c0_i32_0 : i32, i32
  }
  func.func @transform_5(%arg0: i32) -> (i32, i32) {
    %c0_i32 = arith.constant 0 : i32
    %c0_i32_0 = arith.constant 0 : i32
    %c0_i32_1 = arith.constant 0 : i32
    return %c0_i32, %c0_i32_0 : i32, i32
  }
  func.func @transform_6(%arg0: i32) -> (i32, i32) {
    %c0_i32 = arith.constant 0 : i32
    %c0_i32_0 = arith.constant 0 : i32
    %c0_i32_1 = arith.constant 0 : i32
    return %c0_i32, %c0_i32_0 : i32, i32
  }
  func.func @transform_7(%arg0: i32) -> (i32, i32) {
    %c0_i32 = arith.constant 0 : i32
    %c0_i32_0 = arith.constant 0 : i32
    %c0_i32_1 = arith.constant 0 : i32
    return %c0_i32, %c0_i32_0 : i32, i32
  }
  func.func @transform_8(%arg0: i32) -> (i32, i32) {
    %c0_i32 = arith.constant 0 : i32
    %c0_i32_0 = arith.constant 0 : i32
    %c0_i32_1 = arith.constant 0 : i32
    return %c0_i32, %c0_i32_0 : i32, i32
  }
  func.func @transform_9(%arg0: i32) -> (i32, i32) {
    %c0_i32 = arith.constant 0 : i32
    %c0_i32_0 = arith.constant 0 : i32
    %c0_i32_1 = arith.constant 0 : i32
    return %c0_i32, %c0_i32_0 : i32, i32
  }
  func.func @transform_10(%arg0: i32) -> (i32, i32) {
    %c0_i32 = arith.constant 0 : i32
    %c0_i32_0 = arith.constant 0 : i32
    %c0_i32_1 = arith.constant 0 : i32
    return %c0_i32, %c0_i32_0 : i32, i32
  }
  func.func @transform_11(%arg0: i32) -> (i32, i32) {
    %c0_i32 = arith.constant 0 : i32
    %c0_i32_0 = arith.constant 0 : i32
    return %arg0, %c0_i32 : i32, i32
  }
}

</mosaic_0001>

<bundles_post_ra>
// kernel: tpu_custom_call.1
= control target key start
LH: loop header
LB: loop body
LE: loop exit
PB: predicated region body
PF: predicated region fallthrough
CT: control target
= control target key end

     0   :  { %s3242_s0 = inlined_call_operand.vmem [shape: f32[1024,2], index: 0, kind: input, shape index: {}]   ;;  %s3243_s1 = inlined_call_operand.vmem [shape: bf16[2,128], index: 1, kind: input, shape index: {}]   ;;  %s3244_s2 = inlined_call_operand.vmem [shape: f32[1,128], index: 2, kind: input, shape index: {}]   ;;  %s3245_s3 = inlined_call_operand.vmem [shape: bf16[128,128], index: 3, kind: input, shape index: {}]   ;;  %s3246_s4 = inlined_call_operand.vmem [shape: f32[1,128], index: 4, kind: input, shape index: {}]   ;;  %s3247_s5 = inlined_call_operand.vmem [shape: bf16[128,128], index: 5, kind: input, shape index: {}]   ;;  %s3248_s6 = inlined_call_operand.vmem [shape: f32[1,128], index: 6, kind: input, shape index: {}]   ;;  %s3249_s7 = inlined_call_operand.vmem [shape: bf16[128,128], index: 7, kind: input, shape index: {}]   ;;  %s3250_s8 = inlined_call_operand.vmem [shape: f32[1,128], index: 8, kind: input, shape index: {}]   ;;  %s3251_s9 = inlined_call_operand.vmem [shape: bf16[128,128], index: 9, kind: input, shape index: {}]   ;;  %s3252_s10 = inlined_call_operand.vmem [shape: f32[1,128], index: 10, kind: input, shape index: {}]   ;;  %s3253_s11 = inlined_call_operand.hbm [shape: f32[1024,128], index: 11, kind: output, shape index: {}]  }
   0x1   :  { %3254 = sst [smem:[#allocation5_spill]] %s3242_s0 }
   0x2   :  { %16 = vsyncpa [#allocation3], 0 }
   0x3   :  { %18 = vsyncpa [#allocation3 + $0x1], 0  ;;  %s2750_s17 = smov 0   ;;  %s2752_s18 = smov 0  }
   0x4   :  { %s2754_s19 = smov 0   ;;  %s2756_s20 = smov 0  }
   0x5 LB: > { %s2771_s21 = sadd.s32 4294967295, %s2685_s20   ;;  %s1887_s22 = sadd.s32 4294967294, %s2685_s20   ;;  %s2685_s20 = sphi %s2756_s20, %s3261_s20   ;;  %s2681_s19 = sphi %s2754_s19, %s3260_s19   ;;  %s2677_s18 = sphi %s2752_s18, %s3259_s18   ;;  %s2673_s17 = sphi %s2750_s17, %s3258_s17  }
   0x6   : > { %s2775_s23 = sadd.s32 1, %s2685_s20   ;;  %s267_s24 = sadd.s32 1, %s2681_s19 }
   0x7   : > { %s264_s25 = ssub.s32 %s2685_s20, %s2775_s23  ;;  %p277_p0 = scmp.ne.s32.totalorder %s2681_s19, %s2677_s18 }
   0x8   : > { %p265_p1 = scmp.eq.s32.totalorder %s264_s25, 0  ;;  %p278_p2 = scmp.eq.s32.totalorder %s2771_s21, 3 }
   0x9   : > { %p283_p3 = scmp.ne.s32.totalorder %s2677_s18, %s2673_s17  ;;  %p284_p4 = scmp.eq.s32.totalorder %s1887_s22, 3 }
   0xa   : > { %s2786_s26 = scalar_select %p265_p1, %s2681_s19, %s267_s24  }
   0xb   : > { %p2788_p5 = por %p278_p2, %p277_p0  ;;  %p2792_p6 = por %p284_p4, %p283_p3 }
   0xc   : > { %p1890_p7 = scmp.ge.s32.totalorder %s2685_s20, 1  ;;  %p341_p8 = scmp.lt.s32.totalorder %s2685_s20, 5 }
   0xe   : > { %p342_p9 = pnand %p1890_p7, %p341_p8 }
   0xf   : > { %s1892_s12 = sshll.u32 (!%p342_p9), %s2771_s21, 5  ;;  %s3257_s0 = sld [smem:[#allocation5_spill]] (!%p342_p9) }
  0x10   : > { %345 = sbr.rel (%p342_p9) target bundleno = 1171 (0x493), region = 64  ;;  %p382_p10 = scmp.lt.s32.totalorder (!%p342_p9), %s1892_s12, 127 }
  0x11   : > { %s378_s25 = sand.u32 (!%p342_p9), 1, %s2677_s18   ;;  %s1952_s14 = sshll.u32 (!%p342_p9), %s2771_s21, 12 }
  0x12   : > { %s1891_s29 = sshll.u32 (!%p342_p9), %s378_s25, 8  ;;  %s3202_s21 = scalar_lea.sflag (!%p342_p9), [#allocation3], %s378_s25 }
  0x13   : > { %s3126_s13 = scalar_lea.vmem (!%p342_p9), [#allocation2], %s1891_s29  ;;  %s2687_s30 = smov (!%p342_p9), [#allocation2]  }
  0x15   : > { %v437_v0 = vld [vmem:[%s3243_s1] sm:$0x1]  ;;  %vm494_vm0 = vcmask 1040384   ;;  %v2337_v1 = vld [vmem:[%s3245_s3 + $0x38] sm:$0xff]   ;;  %s3263_s12 = smov (!%p382_p10, %s1892_s12), 127  ;;  %vm445_vm1 = vcmask 15360  }
  0x16   : > { %2294 = vmatprep.subr.msk.bf16.mxu0 %vm494_vm0, %v437_v0  ;;  %v496_v2 = vsel %vm494_vm0, %v437_v0, 0  ;;  %2295 = vmatprep.subr.msk.bf16.mxu1 %vm494_vm0, %v437_v0  ;;  %s1893_s15 = sshll.u32 %s3263_s12, 3  ;;  %v2338_v24 = vld [vmem:[%s3245_s3 + $0x30] sm:$0xff]   ;;  %v2339_v52 = vld [vmem:[%s3245_s3 + $0x28] sm:$0xff]   ;;  %v2340_v53 = vld [vmem:[%s3245_s3 + $0x20] sm:$0xff]   ;;  %s2629_s12 = sshll.u32 %s2687_s30, 4  ;;  %s2630_s12 = int_to_ptr.vmem [resolvable:$false] %s2629_s12 }
  0x17   : > { %2067 = vmatpush3.bf16.msra.mxu0 %v496_v2  ;;  %2293 = vmatpush3.bf16.msra.mxu1 %v496_v2  ;;  %s2808_s24 = scalar_lea.vmem %s3257_s0, %s1893_s15  ;;  %v2341_v54 = vld [vmem:[%s3245_s3 + $0x18] sm:$0xff]   ;;  %v2342_v55 = vld [vmem:[%s3245_s3 + $0x10] sm:$0xff]   ;;  %v2343_v56 = vld [vmem:[%s3245_s3 + $0x8] sm:$0xff]   ;;  %s1825_s15 = sshll.u32 %s3126_s13, 4  ;;  %s3195_s15 = int_to_ptr.vmem [resolvable:$true] %s1825_s15 }
  0x18   : > { %2100 = vmatprep.subr.bf16.mxu1 %v2337_v1  ;;  %v389_v3 = vld [vmem:[%s2808_s24] sm:$0xff]  ;;  %v390_v4 = vld [vmem:[%s2808_s24 + $0x8] sm:$0xff]  ;;  %v391_v5 = vld [vmem:[%s2808_s24 + $0x10] sm:$0xff]  ;;  %s2625_s29 = scalar_lea.vmem %s3195_s15, 4096  ;;  %p2632_p0 = scmp.lt.s32.totalorder %s3195_s15, %s2630_s12 }
  0x19   : > { %v421_v6 = vpack.c.bf16 %v390_v4, %v389_v3  ;;  %v392_v7 = vld [vmem:[%s2808_s24 + $0x18] sm:$0xff]  ;;  %v393_v8 = vld [vmem:[%s2808_s24 + $0x20] sm:$0xff]  ;;  %v394_v9 = vld [vmem:[%s2808_s24 + $0x28] sm:$0xff]  ;;  %p2626_p11 = scmp.ne.s32.totalorder %s3195_s15, %s2625_s29 }
  0x1a   : > { %v422_v10 = vpack.c.bf16 %v392_v7, %v391_v5  ;;  %v423_v11 = vpack.c.bf16 %v394_v9, %v393_v8  ;;  %v395_v12 = vld [vmem:[%s2808_s24 + $0x30] sm:$0xff]  ;;  %v396_v13 = vld [vmem:[%s2808_s24 + $0x38] sm:$0xff]  ;;  %v397_v14 = vld [vmem:[%s2808_s24 + $0x40] sm:$0xff] }
  0x1b   : > { %2068 = vmatprep.mubr.msk.bf16.mxu0 %vm445_vm1, %v421_v6  ;;  %v398_v15 = vld [vmem:[%s2808_s24 + $0x48] sm:$0xff]  ;;  %v405_v16 = vld [vmem:[%s2808_s24 + $0x80] sm:$0xff]  ;;  %v407_v19 = vld [vmem:[%s2808_s24 + $0x90] sm:$0xff]  ;;  %v424_v25 = vpack.c.bf16 %v396_v13, %v395_v12  ;;  %p2627_p12 = pnand %p2626_p11, %p2788_p5 }
  0x1c   : > { %2069 = vmatmul.mubr.msk.bf16.vlgmr.msra.gmra.mxu0 %vm445_vm1, %v422_v10  ;;  %v406_v17 = vld [vmem:[%s2808_s24 + $0x88] sm:$0xff]  ;;  %v408_v20 = vld [vmem:[%s2808_s24 + $0x98] sm:$0xff]  ;;  %v409_v21 = vld [vmem:[%s2808_s24 + $0xa0] sm:$0xff]  ;;  %v425_v27 = vpack.c.bf16 %v398_v15, %v397_v14 }
  0x1d   : > { %2072 = vmatprep.mubr.msk.bf16.mxu0 %vm445_vm1, %v423_v11  ;;  %v429_v18 = vpack.c.bf16 %v406_v17, %v405_v16  ;;  %v430_v22 = vpack.c.bf16 %v408_v20, %v407_v19  ;;  %v410_v23 = vld [vmem:[%s2808_s24 + $0xa8] sm:$0xff]  ;;  %v411_v28 = vld [vmem:[%s2808_s24 + $0xb0] sm:$0xff]  ;;  %v412_v29 = vld [vmem:[%s2808_s24 + $0xb8] sm:$0xff]  ;;  %p2628_p13 = pneg %p2627_p12 }
  0x1e   : > { %v431_v26 = vpack.c.bf16 %v410_v23, %v409_v21  ;;  %v413_v30 = vld [vmem:[%s2808_s24 + $0xc0] sm:$0xff]  ;;  %v414_v31 = vld [vmem:[%s2808_s24 + $0xc8] sm:$0xff]  ;;  %v399_v32 = vld [vmem:[%s2808_s24 + $0x50] sm:$0xff]  ;;  %v432_v36 = vpack.c.bf16 %v412_v29, %v411_v28 }
  0x1f   : > { %2084 = vmatprep.mubr.msk.bf16.mxu1 %vm445_vm1, %v429_v18  ;;  %v400_v33 = vld [vmem:[%s2808_s24 + $0x58] sm:$0xff]  ;;  %v401_v34 = vld [vmem:[%s2808_s24 + $0x60] sm:$0xff]  ;;  %v402_v35 = vld [vmem:[%s2808_s24 + $0x68] sm:$0xff]  ;;  %v433_v37 = vpack.c.bf16 %v414_v31, %v413_v30 }
  0x20   : > { %2085 = vmatmul.mubr.msk.bf16.vlgmr.msra.gmra.mxu1 %vm445_vm1, %v430_v22  ;;  %v426_v38 = vpack.c.bf16 %v400_v33, %v399_v32  ;;  %v415_v39 = vld [vmem:[%s2808_s24 + $0xd0] sm:$0xff]  ;;  %v416_v40 = vld [vmem:[%s2808_s24 + $0xd8] sm:$0xff]  ;;  %v427_v41 = vpack.c.bf16 %v402_v35, %v401_v34  ;;  %v417_v42 = vld [vmem:[%s2808_s24 + $0xe0] sm:$0xff] }
  0x21   : > { %2088 = vmatprep.mubr.msk.bf16.mxu1 %vm445_vm1, %v431_v26  ;;  %2101 = vmatpush3.bf16.msra.mxu1 %v2337_v1  ;;  %v418_v43 = vld [vmem:[%s2808_s24 + $0xe8] sm:$0xff]  ;;  %v403_v44 = vld [vmem:[%s2808_s24 + $0x70] sm:$0xff]  ;;  %v404_v45 = vld [vmem:[%s2808_s24 + $0x78] sm:$0xff]  ;;  %v434_v46 = vpack.c.bf16 %v416_v40, %v415_v39 }
  0x22   : > { %2102 = vmatprep.subr.bf16.mxu1 %v2338_v24  ;;  %v435_v47 = vpack.c.bf16 %v418_v43, %v417_v42  ;;  %v428_v48 = vpack.c.bf16 %v404_v45, %v403_v44  ;;  %v419_v49 = vld [vmem:[%s2808_s24 + $0xf0] sm:$0xff]  ;;  %v420_v50 = vld [vmem:[%s2808_s24 + $0xf8] sm:$0xff]  ;;  %v2344_v57 = vld [vmem:[%s3245_s3] sm:$0xff]   ;;  %s3193_s24 = scalar_lea.hbm %s3253_s11, %s1952_s14  ;;  %s2631_s14 = scalar_lea.vmem %s2630_s12, 8192 }
  0x23   : > { %v436_v51 = vpack.c.bf16 %v420_v50, %v419_v49  ;;  %v2345_v58 = vld [vmem:[%s3247_s5 + $0x38] sm:$0xff]   ;;  %v2346_v59 = vld [vmem:[%s3247_s5 + $0x30] sm:$0xff]   ;;  %v2888_v61 = vld [vmem:[%s3244_s2] ss:$0 sm:$0xff]  ;;  %p2633_p1 = scmp.lt.s32.totalorder %s2631_s14, %s2625_s29 }
  0x24   : > { %2073 = vmatmul.mubr.msk.bf16.gmra.mxu0 %vm445_vm1, %v424_v25  ;;  %2148 = vmatprep.subr.bf16.mxu0 %v2345_v58 }
  0x25   : > { %2076 = vmatprep.mubr.msk.bf16.mxu0 %vm445_vm1, %v425_v27  ;;  %2103 = vmatpush3.bf16.msra.mxu1 %v2338_v24  ;;  %p2634_p2 = por %p2633_p1, %p2632_p0 }
  0x26   : > { %2104 = vmatprep.subr.bf16.mxu1 %v2339_v52  ;;  %2149 = vmatpush3.bf16.msra.mxu0 %v2345_v58 }
  0x27   : > { %2150 = vmatprep.subr.bf16.mxu0 %v2346_v59  ;;  %p2635_p3 = pnand %p2634_p2, %p2628_p13 }
  0x28   : > { %2089 = vmatmul.mubr.msk.bf16.gmra.mxu1 %vm445_vm1, %v432_v36 }
  0x29   : > { %2092 = vmatprep.mubr.msk.bf16.mxu1 %vm445_vm1, %v433_v37  ;;  %2105 = vmatpush3.bf16.msra.mxu1 %v2339_v52 }
  0x2a   : > { %2106 = vmatprep.subr.bf16.mxu1 %v2340_v53  ;;  %2151 = vmatpush3.bf16.msra.mxu0 %v2346_v59 }
  0x2c   : > { %2077 = vmatmul.mubr.msk.bf16.gmra.mxu0 %vm445_vm1, %v426_v38 }
  0x2d   : > { %2080 = vmatprep.mubr.msk.bf16.mxu0 %vm445_vm1, %v427_v41  ;;  %2107 = vmatpush3.bf16.msra.mxu1 %v2340_v53 }
  0x2e   : > { %2108 = vmatprep.subr.bf16.mxu1 %v2341_v54 }
  0x30   : > { %2093 = vmatmul.mubr.msk.bf16.gmra.mxu1 %vm445_vm1, %v434_v46 }
  0x31   : > { %2096 = vmatprep.mubr.msk.bf16.mxu1 %vm445_vm1, %v435_v47  ;;  %2109 = vmatpush3.bf16.msra.mxu1 %v2341_v54 }
  0x32   : > { %2110 = vmatprep.subr.bf16.mxu1 %v2342_v55 }
  0x34   : > { %2081 = vmatmul.mubr.msk.bf16.gmra.mxu0 %vm445_vm1, %v428_v48 }
  0x35   : > { %2111 = vmatpush3.bf16.msra.mxu1 %v2342_v55 }
  0x36   : > { %2112 = vmatprep.subr.bf16.mxu1 %v2343_v56 }
  0x38   : > { %2097 = vmatmul.mubr.msk.bf16.gmra.mxu1 %vm445_vm1, %v436_v51 }
  0x39   : > { %2113 = vmatpush3.bf16.msra.mxu1 %v2343_v56 }
  0x3a   : > { %2114 = vmatprep.subr.bf16.mxu1 %v2344_v57 }
  0x3d   : > { %2115 = vmatpush3.bf16.msra.mxu1 %v2344_v57 }
  0xdc   : > { %v2070_v60 = vpop.f32.mrf.mxu0 }
  0xdd   : > { %v541_v3 = vadd.f32 %v2070_v60, %v2888_v61 }
  0xde   : > { %v532_v62 = vpop.f32.mrf.mxu0 }
  0xdf   : > { %v533_v63 = vadd.f32 %v2888_v61, %v532_v62 }
  0xe0   : > { %v2071_v0 = vpop.f32.mrf.mxu0  ;;  %v2892_v2 = vpop.f32.mrf.mxu1 }
  0xe1   : > { %v544_v1 = vadd.f32 %v2071_v0, %v2888_v61  ;;  %2369 = vtanh.f32 %v533_v63  ;;  %v605_v55 = vadd.f32 %v2892_v2, %v2888_v61 }
  0xe2   : > { %v535_v4 = vpop.f32.mrf.mxu0  ;;  %v596_v6 = vpop.f32.mrf.mxu1 }
  0xe3   : > { %v536_v5 = vadd.f32 %v2888_v61, %v535_v4  ;;  %2371 = vtanh.f32 %v544_v1  ;;  %v597_v38 = vadd.f32 %v2888_v61, %v596_v6 }
  0xe4   : > { %v2074_v7 = vpop.f32.mrf.mxu0  ;;  %v2896_v8 = vpop.f32.mrf.mxu1 }
  0xe5   : > { %2373 = vtanh.f32 %v536_v5  ;;  %v557_v15 = vadd.f32 %v2074_v7, %v2888_v61  ;;  %v608_v59 = vadd.f32 %v2896_v8, %v2888_v61 }
  0xe6   : > { %2375 = vtanh.f32 %v541_v3  ;;  %v548_v9 = vpop.f32.mrf.mxu0  ;;  %v599_v11 = vpop.f32.mrf.mxu1 }
  0xe7   : > { %v549_v10 = vadd.f32 %v2888_v61, %v548_v9  ;;  %v600_v40 = vadd.f32 %v2888_v61, %v599_v11 }
  0xe8   : > { %v2075_v12 = vpop.f32.mrf.mxu0  ;;  %v2900_v14 = vpop.f32.mrf.mxu1 }
  0xe9   : > { %v560_v13 = vadd.f32 %v2075_v12, %v2888_v61  ;;  %2377 = vtanh.f32 %v549_v10  ;;  %v621_v4 = vadd.f32 %v2900_v14, %v2888_v61 }
  0xea   : > { %v551_v16 = vpop.f32.mrf.mxu0  ;;  %v612_v18 = vpop.f32.mrf.mxu1 }
  0xeb   : > { %v552_v17 = vadd.f32 %v2888_v61, %v551_v16  ;;  %2379 = vtanh.f32 %v560_v13  ;;  %v613_v56 = vadd.f32 %v2888_v61, %v612_v18 }
  0xec   : > { %v2078_v19 = vpop.f32.mrf.mxu0  ;;  %v2904_v20 = vpop.f32.mrf.mxu1 }
  0xed   : > { %2381 = vtanh.f32 %v552_v17  ;;  %v573_v30 = vadd.f32 %v2078_v19, %v2888_v61  ;;  %v624_v10 = vadd.f32 %v2904_v20, %v2888_v61 }
  0xee   : > { %2383 = vtanh.f32 %v557_v15  ;;  %v564_v21 = vpop.f32.mrf.mxu0  ;;  %v615_v23 = vpop.f32.mrf.mxu1 }
  0xef   : > { %v565_v22 = vadd.f32 %v2888_v61, %v564_v21  ;;  %v2370_v24 = vpop.eup %2369  ;;  %v616_v57 = vadd.f32 %v2888_v61, %v615_v23 }
  0xf0   : > { %v2079_v25 = vpop.f32.mrf.mxu0  ;;  %v2372_v26 = vpop.eup %2371 }
  0xf1   : > { %v576_v27 = vadd.f32 %v2079_v25, %v2888_v61  ;;  %v2908_v28 = vpop.f32.mrf.mxu1  ;;  %2385 = vtanh.f32 %v565_v22 }
  0xf2   : > { %v2374_v29 = vpop.eup %2373  ;;  %v567_v31 = vpop.f32.mrf.mxu0  ;;  %v637_v19 = vadd.f32 %v2908_v28, %v2888_v61 }
  0xf3   : > { %v2376_v32 = vpop.eup %2375  ;;  %v568_v33 = vadd.f32 %v2888_v61, %v567_v31  ;;  %v691_v34 = vpack.c.bf16 %v2374_v29, %v2370_v24  ;;  %2387 = vtanh.f32 %v576_v27  ;;  %v628_v37 = vpop.f32.mrf.mxu1 }
  0xf4   : > { %v2082_v35 = vpop.f32.mrf.mxu0  ;;  %v692_v36 = vpack.c.bf16 %v2372_v26, %v2376_v32  ;;  %v629_v6 = vadd.f32 %v2888_v61, %v628_v37 }
  0xf5   : > { %2389 = vtanh.f32 %v568_v33  ;;  %2116 = vmatprep.mubr.bf16.mxu1 %v691_v34  ;;  %v2915_v44 = vpop.f32.mrf.mxu1  ;;  %v589_v48 = vadd.f32 %v2082_v35, %v2888_v61 }
  0xf6   : > { %2391 = vtanh.f32 %v573_v30  ;;  %v580_v39 = vpop.f32.mrf.mxu0  ;;  %2117 = vmatmul.mubr.bf16.vlgmr.msra.gmra.mxu1 %v692_v36  ;;  %v2378_v42 = vpop.eup %2377  ;;  %v640_v25 = vadd.f32 %v2915_v44, %v2888_v61 }
  0xf7   : > { %v581_v41 = vadd.f32 %v2888_v61, %v580_v39  ;;  %2393 = vtanh.f32 %v597_v38  ;;  %v631_v54 = vpop.f32.mrf.mxu1 }
  0xf8   : > { %v2083_v43 = vpop.f32.mrf.mxu0  ;;  %v2380_v45 = vpop.eup %2379  ;;  %2395 = vtanh.f32 %v600_v40  ;;  %v632_v8 = vadd.f32 %v2888_v61, %v631_v54  ;;  %v2356_v54 = vld [vmem:[%s3249_s7 + $0x20] sm:$0xff]  }
  0xf9   : > { %v592_v46 = vadd.f32 %v2083_v43, %v2888_v61  ;;  %2397 = vtanh.f32 %v581_v41  ;;  %v2098_v60 = vpop.f32.mrf.mxu1 }
  0xfa   : > { %v2382_v47 = vpop.eup %2381  ;;  %v583_v49 = vpop.f32.mrf.mxu0  ;;  %v653_v31 = vadd.f32 %v2098_v60, %v2888_v61 }
  0xfb   : > { %v2384_v50 = vpop.eup %2383  ;;  %v584_v51 = vadd.f32 %v2888_v61, %v583_v49  ;;  %v693_v52 = vpack.c.bf16 %v2382_v47, %v2378_v42  ;;  %2399 = vtanh.f32 %v592_v46  ;;  %v644_v3 = vpop.f32.mrf.mxu1  ;;  %v2348_v46 = vld [vmem:[%s3247_s5 + $0x20] sm:$0xff]   ;;  %v2349_v47 = vld [vmem:[%s3247_s5 + $0x18] sm:$0xff]   ;;  %v2351_v49 = vld [vmem:[%s3247_s5 + $0x8] sm:$0xff]  }
  0xfc   : > { %v694_v53 = vpack.c.bf16 %v2380_v45, %v2384_v50  ;;  %v645_v20 = vadd.f32 %v2888_v61, %v644_v3  ;;  %v2352_v50 = vld [vmem:[%s3247_s5] sm:$0xff]  }
  0xfd   : > { %2401 = vtanh.f32 %v584_v51  ;;  %2120 = vmatprep.mubr.bf16.mxu1 %v693_v52  ;;  %v2099_v11 = vpop.f32.mrf.mxu1  ;;  %v2353_v51 = vld [vmem:[%s3249_s7 + $0x38] sm:$0xff]   ;;  %v2354_v52 = vld [vmem:[%s3249_s7 + $0x30] sm:$0xff]  }
  0xfe   : > { %2403 = vtanh.f32 %v589_v48  ;;  %2121 = vmatmul.mubr.bf16.gmra.mxu1 %v694_v53  ;;  %v2386_v58 = vpop.eup %2385  ;;  %v656_v33 = vadd.f32 %v2099_v11, %v2888_v61  ;;  %v2350_v48 = vld [vmem:[%s3247_s5 + $0x10] sm:$0xff]   ;;  %2196 = vmatprep.subr.bf16.mxu1 %v2353_v51  ;;  %v2355_v53 = vld [vmem:[%s3249_s7 + $0x28] sm:$0xff]  }
  0xff   : > { %2405 = vtanh.f32 %v605_v55  ;;  %v647_v18 = vpop.f32.mrf.mxu1  ;;  %2197 = vmatpush3.bf16.msra.mxu1 %v2353_v51  ;;  %v2357_v55 = vld [vmem:[%s3249_s7 + $0x18] sm:$0xff]  }
 0x100   : > { %v2388_v62 = vpop.eup %2387  ;;  %2407 = vtanh.f32 %v613_v56  ;;  %v648_v23 = vadd.f32 %v2888_v61, %v647_v18  ;;  %v2347_v61 = vld [vmem:[%s3247_s5 + $0x28] sm:$0xff]   ;;  %2198 = vmatprep.subr.bf16.mxu1 %v2354_v52 }
 0x101   : > { %2409 = vtanh.f32 %v616_v57  ;;  %2152 = vmatprep.subr.bf16.mxu0 %v2347_v61  ;;  %v2976_v57 = vld [vmem:[%s3246_s4] ss:$0 sm:$0xff] }
 0x102   : > { %v2390_v63 = vpop.eup %2389  ;;  %2411 = vtanh.f32 %v608_v59  ;;  %2153 = vmatpush3.bf16.msra.mxu0 %v2347_v61 }
 0x103   : > { %v2392_v0 = vpop.eup %2391  ;;  %v695_v1 = vpack.c.bf16 %v2390_v63, %v2386_v58  ;;  %2413 = vtanh.f32 %v621_v4  ;;  %2154 = vmatprep.subr.bf16.mxu0 %v2348_v46  ;;  %2199 = vmatpush3.bf16.msra.mxu1 %v2354_v52 }
 0x104   : > { %v696_v2 = vpack.c.bf16 %v2388_v62, %v2392_v0  ;;  %v2394_v5 = vpop.eup %2393  ;;  %2415 = vtanh.f32 %v629_v6  ;;  %2200 = vmatprep.subr.bf16.mxu1 %v2355_v53 }
 0x105   : > { %2124 = vmatprep.mubr.bf16.mxu1 %v695_v1  ;;  %v2396_v7 = vpop.eup %2395  ;;  %2417 = vtanh.f32 %v632_v8 }
 0x106   : > { %2125 = vmatmul.mubr.bf16.gmra.mxu1 %v696_v2  ;;  %v2398_v9 = vpop.eup %2397  ;;  %v699_v16 = vpack.c.bf16 %v2396_v7, %v2394_v5  ;;  %2419 = vtanh.f32 %v624_v10  ;;  %2155 = vmatpush3.bf16.msra.mxu0 %v2348_v46 }
 0x107   : > { %2421 = vtanh.f32 %v637_v19  ;;  %2156 = vmatprep.subr.bf16.mxu0 %v2349_v47  ;;  %2201 = vmatpush3.bf16.msra.mxu1 %v2355_v53 }
 0x108   : > { %v2400_v12 = vpop.eup %2399  ;;  %2423 = vtanh.f32 %v645_v20  ;;  %2202 = vmatprep.subr.bf16.mxu1 %v2356_v54 }
 0x109   : > { %2425 = vtanh.f32 %v648_v23 }
 0x10a   : > { %v2402_v13 = vpop.eup %2401  ;;  %2427 = vtanh.f32 %v640_v25  ;;  %2157 = vmatpush3.bf16.msra.mxu0 %v2349_v47 }
 0x10b   : > { %v2404_v15 = vpop.eup %2403  ;;  %v697_v14 = vpack.c.bf16 %v2402_v13, %v2398_v9  ;;  %2429 = vtanh.f32 %v653_v31  ;;  %2158 = vmatprep.subr.bf16.mxu0 %v2350_v48  ;;  %2203 = vmatpush3.bf16.msra.mxu1 %v2356_v54 }
 0x10c   : > { %v698_v17 = vpack.c.bf16 %v2400_v12, %v2404_v15  ;;  %v2406_v21 = vpop.eup %2405  ;;  %2431 = vtanh.f32 %v656_v33  ;;  %2204 = vmatprep.subr.bf16.mxu1 %v2357_v55 }
 0x10d   : > { %2128 = vmatprep.mubr.bf16.mxu1 %v697_v14  ;;  %v2408_v22 = vpop.eup %2407 }
 0x10e   : > { %2129 = vmatmul.mubr.bf16.gmra.mxu1 %v698_v17  ;;  %v2410_v24 = vpop.eup %2409  ;;  %2159 = vmatpush3.bf16.msra.mxu0 %v2350_v48 }
 0x10f   : > { %2132 = vmatprep.mubr.bf16.mxu1 %v699_v16  ;;  %v2412_v26 = vpop.eup %2411  ;;  %v701_v27 = vpack.c.bf16 %v2410_v24, %v2408_v22  ;;  %2160 = vmatprep.subr.bf16.mxu0 %v2351_v49 }
 0x110   : > { %v700_v28 = vpack.c.bf16 %v2412_v26, %v2406_v21  ;;  %v2414_v29 = vpop.eup %2413  ;;  %2205 = vmatpush3.bf16.msra.mxu1 %v2357_v55 }
 0x111   : > { %v2416_v30 = vpop.eup %2415 }
 0x112   : > { %v2418_v32 = vpop.eup %2417  ;;  %2161 = vmatpush3.bf16.msra.mxu0 %v2351_v49 }
 0x113   : > { %v2420_v34 = vpop.eup %2419  ;;  %v703_v35 = vpack.c.bf16 %v2418_v32, %v2416_v30  ;;  %2162 = vmatprep.subr.bf16.mxu0 %v2352_v50 }
 0x114   : > { %v702_v36 = vpack.c.bf16 %v2420_v34, %v2414_v29  ;;  %v2422_v37 = vpop.eup %2421 }
 0x115   : > { %v2424_v38 = vpop.eup %2423 }
 0x116   : > { %2133 = vmatmul.mubr.bf16.gmra.mxu1 %v700_v28  ;;  %v2426_v39 = vpop.eup %2425  ;;  %2163 = vmatpush3.bf16.msra.mxu0 %v2352_v50 }
 0x117   : > { %2136 = vmatprep.mubr.bf16.mxu1 %v701_v27  ;;  %v2428_v40 = vpop.eup %2427  ;;  %v705_v41 = vpack.c.bf16 %v2426_v39, %v2424_v38 }
 0x118   : > { %v704_v42 = vpack.c.bf16 %v2428_v40, %v2422_v37  ;;  %v2430_v43 = vpop.eup %2429 }
 0x119   : > { %v2432_v44 = vpop.eup %2431 }
 0x11a   : > { %v706_v45 = vpack.c.bf16 %v2432_v44, %v2430_v43 }
 0x11e   : > { %2137 = vmatmul.mubr.bf16.gmra.mxu1 %v702_v36 }
 0x11f   : > { %2140 = vmatprep.mubr.bf16.mxu1 %v703_v35 }
 0x126   : > { %2141 = vmatmul.mubr.bf16.gmra.mxu1 %v704_v42 }
 0x127   : > { %2144 = vmatprep.mubr.bf16.mxu1 %v705_v41 }
 0x12e   : > { %2145 = vmatmul.mubr.bf16.gmra.mxu1 %v706_v45 }
 0x1b6   : > { %v2118_v56 = vpop.f32.mrf.mxu1 }
 0x1b7   : > { %v821_v63 = vadd.f32 %v2118_v56, %v2976_v57 }
 0x1b8   : > { %v812_v58 = vpop.f32.mrf.mxu1 }
 0x1b9   : > { %v813_v59 = vadd.f32 %v2976_v57, %v812_v58 }
 0x1ba   : > { %v2119_v60 = vpop.f32.mrf.mxu1 }
 0x1bb   : > { %v824_v62 = vadd.f32 %v2119_v60, %v2976_v57  ;;  %2433 = vtanh.f32 %v813_v59 }
 0x1bc   : > { %v815_v0 = vpop.f32.mrf.mxu1 }
 0x1bd   : > { %v816_v1 = vadd.f32 %v2976_v57, %v815_v0  ;;  %2435 = vtanh.f32 %v824_v62 }
 0x1be   : > { %v2122_v2 = vpop.f32.mrf.mxu1 }
 0x1bf   : > { %2437 = vtanh.f32 %v816_v1  ;;  %v837_v7 = vadd.f32 %v2122_v2, %v2976_v57 }
 0x1c0   : > { %2439 = vtanh.f32 %v821_v63  ;;  %v828_v3 = vpop.f32.mrf.mxu1 }
 0x1c1   : > { %v829_v4 = vadd.f32 %v2976_v57, %v828_v3 }
 0x1c2   : > { %v2123_v5 = vpop.f32.mrf.mxu1 }
 0x1c3   : > { %v840_v6 = vadd.f32 %v2123_v5, %v2976_v57  ;;  %2441 = vtanh.f32 %v829_v4 }
 0x1c4   : > { %v831_v8 = vpop.f32.mrf.mxu1 }
 0x1c5   : > { %v832_v9 = vadd.f32 %v2976_v57, %v831_v8  ;;  %2443 = vtanh.f32 %v840_v6 }
 0x1c6   : > { %v2126_v10 = vpop.f32.mrf.mxu1 }
 0x1c7   : > { %2445 = vtanh.f32 %v832_v9  ;;  %v853_v18 = vadd.f32 %v2126_v10, %v2976_v57 }
 0x1c8   : > { %2447 = vtanh.f32 %v837_v7  ;;  %v844_v11 = vpop.f32.mrf.mxu1  ;;  %v2434_v13 = vpop.eup %2433 }
 0x1c9   : > { %v845_v12 = vadd.f32 %v2976_v57, %v844_v11 }
 0x1ca   : > { %v2127_v15 = vpop.f32.mrf.mxu1  ;;  %v2436_v14 = vpop.eup %2435 }
 0x1cb   : > { %v856_v16 = vadd.f32 %v2127_v15, %v2976_v57  ;;  %2449 = vtanh.f32 %v845_v12 }
 0x1cc   : > { %v2438_v17 = vpop.eup %2437  ;;  %v847_v19 = vpop.f32.mrf.mxu1 }
 0x1cd   : > { %v2440_v21 = vpop.eup %2439  ;;  %v848_v20 = vadd.f32 %v2976_v57, %v847_v19  ;;  %v971_v22 = vpack.c.bf16 %v2438_v17, %v2434_v13  ;;  %2451 = vtanh.f32 %v856_v16 }
 0x1ce   : > { %v2130_v23 = vpop.f32.mrf.mxu1  ;;  %v972_v24 = vpack.c.bf16 %v2436_v14, %v2440_v21 }
 0x1cf   : > { %2453 = vtanh.f32 %v848_v20  ;;  %2164 = vmatprep.mubr.bf16.mxu0 %v971_v22  ;;  %v869_v32 = vadd.f32 %v2130_v23, %v2976_v57 }
 0x1d0   : > { %2455 = vtanh.f32 %v853_v18  ;;  %v860_v25 = vpop.f32.mrf.mxu1  ;;  %2165 = vmatmul.mubr.bf16.vlgmr.msra.gmra.mxu0 %v972_v24  ;;  %v2442_v27 = vpop.eup %2441 }
 0x1d1   : > { %v861_v26 = vadd.f32 %v2976_v57, %v860_v25 }
 0x1d2   : > { %v2131_v28 = vpop.f32.mrf.mxu1  ;;  %v2444_v29 = vpop.eup %2443 }
 0x1d3   : > { %v872_v30 = vadd.f32 %v2131_v28, %v2976_v57  ;;  %2457 = vtanh.f32 %v861_v26 }
 0x1d4   : > { %v2446_v31 = vpop.eup %2445  ;;  %v863_v33 = vpop.f32.mrf.mxu1 }
 0x1d5   : > { %v2448_v34 = vpop.eup %2447  ;;  %v864_v35 = vadd.f32 %v2976_v57, %v863_v33  ;;  %v973_v36 = vpack.c.bf16 %v2446_v31, %v2442_v27  ;;  %2459 = vtanh.f32 %v872_v30 }
 0x1d6   : > { %v2134_v37 = vpop.f32.mrf.mxu1  ;;  %v974_v38 = vpack.c.bf16 %v2444_v29, %v2448_v34 }
 0x1d7   : > { %2461 = vtanh.f32 %v864_v35  ;;  %2168 = vmatprep.mubr.bf16.mxu0 %v973_v36  ;;  %v885_v61 = vadd.f32 %v2134_v37, %v2976_v57 }
 0x1d8   : > { %2463 = vtanh.f32 %v869_v32  ;;  %v876_v39 = vpop.f32.mrf.mxu1  ;;  %2169 = vmatmul.mubr.bf16.gmra.mxu0 %v974_v38  ;;  %v2450_v41 = vpop.eup %2449 }
 0x1d9   : > { %v877_v40 = vadd.f32 %v2976_v57, %v876_v39 }
 0x1da   : > { %v2135_v42 = vpop.f32.mrf.mxu1  ;;  %v2452_v43 = vpop.eup %2451 }
 0x1db   : > { %v888_v44 = vadd.f32 %v2135_v42, %v2976_v57  ;;  %2465 = vtanh.f32 %v877_v40  ;;  %v2358_v42 = vld [vmem:[%s3249_s7 + $0x10] sm:$0xff]  }
 0x1dc   : > { %v2454_v45 = vpop.eup %2453  ;;  %v879_v46 = vpop.f32.mrf.mxu1  ;;  %2206 = vmatprep.subr.bf16.mxu1 %v2358_v42 }
 0x1dd   : > { %v2456_v47 = vpop.eup %2455  ;;  %v880_v48 = vadd.f32 %v2976_v57, %v879_v46  ;;  %v975_v49 = vpack.c.bf16 %v2454_v45, %v2450_v41  ;;  %2467 = vtanh.f32 %v888_v44  ;;  %2207 = vmatpush3.bf16.msra.mxu1 %v2358_v42  ;;  %v2360_v44 = vld [vmem:[%s3249_s7] sm:$0xff]   ;;  %v2361_v45 = vld [vmem:[%s3251_s9 + $0x38] sm:$0xff]   ;;  %v2363_v46 = vld [vmem:[%s3251_s9 + $0x28] sm:$0xff]  }
 0x1de   : > { %v2138_v50 = vpop.f32.mrf.mxu1  ;;  %v976_v51 = vpack.c.bf16 %v2452_v43, %v2456_v47  ;;  %v2359_v43 = vld [vmem:[%s3249_s7 + $0x8] sm:$0xff]   ;;  %2244 = vmatprep.subr.bf16.mxu0 %v2361_v45  ;;  %v2364_v47 = vld [vmem:[%s3251_s9 + $0x20] sm:$0xff]  }
 0x1df   : > { %2469 = vtanh.f32 %v880_v48  ;;  %2172 = vmatprep.mubr.bf16.mxu0 %v975_v49  ;;  %v901_v60 = vadd.f32 %v2138_v50, %v2976_v57  ;;  %2208 = vmatprep.subr.bf16.mxu1 %v2359_v43  ;;  %v2365_v48 = vld [vmem:[%s3251_s9 + $0x18] sm:$0xff]   ;;  %v3037_v50 = vld [vmem:[%s3248_s6] ss:$0 sm:$0xff] }
 0x1e0   : > { %2471 = vtanh.f32 %v885_v61  ;;  %v892_v52 = vpop.f32.mrf.mxu1  ;;  %2173 = vmatmul.mubr.bf16.gmra.mxu0 %v976_v51  ;;  %v2458_v54 = vpop.eup %2457  ;;  %v2362_v61 = vld [vmem:[%s3251_s9 + $0x30] sm:$0xff]  }
 0x1e1   : > { %v893_v53 = vadd.f32 %v2976_v57, %v892_v52  ;;  %2209 = vmatpush3.bf16.msra.mxu1 %v2359_v43  ;;  %2245 = vmatpush3.bf16.msra.mxu0 %v2361_v45 }
 0x1e2   : > { %v2139_v55 = vpop.f32.mrf.mxu1  ;;  %v2460_v56 = vpop.eup %2459  ;;  %2210 = vmatprep.subr.bf16.mxu1 %v2360_v44  ;;  %2246 = vmatprep.subr.bf16.mxu0 %v2362_v61 }
 0x1e3   : > { %v904_v58 = vadd.f32 %v2139_v55, %v2976_v57  ;;  %2473 = vtanh.f32 %v893_v53 }
 0x1e4   : > { %v2462_v59 = vpop.eup %2461  ;;  %v895_v62 = vpop.f32.mrf.mxu1 }
 0x1e5   : > { %v2464_v63 = vpop.eup %2463  ;;  %v896_v0 = vadd.f32 %v2976_v57, %v895_v62  ;;  %v977_v1 = vpack.c.bf16 %v2462_v59, %v2458_v54  ;;  %2475 = vtanh.f32 %v904_v58  ;;  %2211 = vmatpush3.bf16.msra.mxu1 %v2360_v44  ;;  %2247 = vmatpush3.bf16.msra.mxu0 %v2362_v61 }
 0x1e6   : > { %v2142_v2 = vpop.f32.mrf.mxu1  ;;  %v978_v3 = vpack.c.bf16 %v2460_v56, %v2464_v63  ;;  %2248 = vmatprep.subr.bf16.mxu0 %v2363_v46 }
 0x1e7   : > { %2477 = vtanh.f32 %v896_v0  ;;  %2176 = vmatprep.mubr.bf16.mxu0 %v977_v1  ;;  %v917_v11 = vadd.f32 %v2142_v2, %v2976_v57 }
 0x1e8   : > { %2479 = vtanh.f32 %v901_v60  ;;  %v908_v4 = vpop.f32.mrf.mxu1  ;;  %2177 = vmatmul.mubr.bf16.gmra.mxu0 %v978_v3  ;;  %v2466_v6 = vpop.eup %2465 }
 0x1e9   : > { %v909_v5 = vadd.f32 %v2976_v57, %v908_v4  ;;  %2249 = vmatpush3.bf16.msra.mxu0 %v2363_v46 }
 0x1ea   : > { %v2143_v7 = vpop.f32.mrf.mxu1  ;;  %v2468_v8 = vpop.eup %2467  ;;  %2250 = vmatprep.subr.bf16.mxu0 %v2364_v47 }
 0x1eb   : > { %v920_v9 = vadd.f32 %v2143_v7, %v2976_v57  ;;  %2481 = vtanh.f32 %v909_v5 }
 0x1ec   : > { %v2470_v10 = vpop.eup %2469  ;;  %v911_v12 = vpop.f32.mrf.mxu1 }
 0x1ed   : > { %v2472_v13 = vpop.eup %2471  ;;  %v912_v15 = vadd.f32 %v2976_v57, %v911_v12  ;;  %v979_v14 = vpack.c.bf16 %v2470_v10, %v2466_v6  ;;  %2483 = vtanh.f32 %v920_v9  ;;  %2251 = vmatpush3.bf16.msra.mxu0 %v2364_v47 }
 0x1ee   : > { %v2146_v16 = vpop.f32.mrf.mxu1  ;;  %v980_v17 = vpack.c.bf16 %v2468_v8, %v2472_v13  ;;  %2252 = vmatprep.subr.bf16.mxu0 %v2365_v48 }
 0x1ef   : > { %2485 = vtanh.f32 %v912_v15  ;;  %2180 = vmatprep.mubr.bf16.mxu0 %v979_v14  ;;  %v933_v25 = vadd.f32 %v2146_v16, %v2976_v57 }
 0x1f0   : > { %2487 = vtanh.f32 %v917_v11  ;;  %v924_v18 = vpop.f32.mrf.mxu1  ;;  %2181 = vmatmul.mubr.bf16.gmra.mxu0 %v980_v17  ;;  %v2474_v21 = vpop.eup %2473 }
 0x1f1   : > { %v925_v19 = vadd.f32 %v2976_v57, %v924_v18  ;;  %2253 = vmatpush3.bf16.msra.mxu0 %v2365_v48 }
 0x1f2   : > { %v2147_v20 = vpop.f32.mrf.mxu1  ;;  %v2476_v22 = vpop.eup %2475 }
 0x1f3   : > { %v936_v23 = vadd.f32 %v2147_v20, %v2976_v57  ;;  %2489 = vtanh.f32 %v925_v19 }
 0x1f4   : > { %v2478_v24 = vpop.eup %2477  ;;  %v927_v26 = vpop.f32.mrf.mxu1 }
 0x1f5   : > { %v2480_v27 = vpop.eup %2479  ;;  %v928_v28 = vadd.f32 %v2976_v57, %v927_v26  ;;  %v981_v29 = vpack.c.bf16 %v2478_v24, %v2474_v21  ;;  %2491 = vtanh.f32 %v936_v23 }
 0x1f6   : > { %v982_v30 = vpack.c.bf16 %v2476_v22, %v2480_v27 }
 0x1f7   : > { %2493 = vtanh.f32 %v928_v28  ;;  %2184 = vmatprep.mubr.bf16.mxu0 %v981_v29 }
 0x1f8   : > { %2495 = vtanh.f32 %v933_v25  ;;  %2185 = vmatmul.mubr.bf16.gmra.mxu0 %v982_v30  ;;  %v2482_v31 = vpop.eup %2481 }
 0x1fa   : > { %v2484_v32 = vpop.eup %2483 }
 0x1fc   : > { %v2486_v33 = vpop.eup %2485 }
 0x1fd   : > { %v2488_v34 = vpop.eup %2487  ;;  %v983_v35 = vpack.c.bf16 %v2486_v33, %v2482_v31 }
 0x1fe   : > { %v984_v36 = vpack.c.bf16 %v2484_v32, %v2488_v34 }
 0x1ff   : > { %2188 = vmatprep.mubr.bf16.mxu0 %v983_v35 }
 0x200   : > { %2189 = vmatmul.mubr.bf16.gmra.mxu0 %v984_v36  ;;  %v2490_v37 = vpop.eup %2489 }
 0x202   : > { %v2492_v38 = vpop.eup %2491 }
 0x204   : > { %v2494_v39 = vpop.eup %2493 }
 0x205   : > { %v2496_v40 = vpop.eup %2495  ;;  %v985_v57 = vpack.c.bf16 %v2494_v39, %v2490_v37 }
 0x206   : > { %v986_v41 = vpack.c.bf16 %v2492_v38, %v2496_v40 }
 0x207   : > { %2192 = vmatprep.mubr.bf16.mxu0 %v985_v57 }
 0x208   : > { %2193 = vmatmul.mubr.bf16.gmra.mxu0 %v986_v41 }
 0x290   : > { %v2166_v49 = vpop.f32.mrf.mxu0 }
 0x291   : > { %v1101_v55 = vadd.f32 %v2166_v49, %v3037_v50 }
 0x292   : > { %v1092_v51 = vpop.f32.mrf.mxu0 }
 0x293   : > { %v1093_v52 = vadd.f32 %v3037_v50, %v1092_v51 }
 0x294   : > { %v2167_v53 = vpop.f32.mrf.mxu0 }
 0x295   : > { %v1104_v54 = vadd.f32 %v2167_v53, %v3037_v50  ;;  %2497 = vtanh.f32 %v1093_v52 }
 0x296   : > { %v1095_v56 = vpop.f32.mrf.mxu0 }
 0x297   : > { %v1096_v58 = vadd.f32 %v3037_v50, %v1095_v56  ;;  %2499 = vtanh.f32 %v1104_v54 }
 0x298   : > { %v2170_v59 = vpop.f32.mrf.mxu0 }
 0x299   : > { %2501 = vtanh.f32 %v1096_v58  ;;  %v1117_v1 = vadd.f32 %v2170_v59, %v3037_v50 }
 0x29a   : > { %2503 = vtanh.f32 %v1101_v55  ;;  %v1108_v60 = vpop.f32.mrf.mxu0 }
 0x29b   : > { %v1109_v62 = vadd.f32 %v3037_v50, %v1108_v60 }
 0x29c   : > { %v2171_v63 = vpop.f32.mrf.mxu0 }
 0x29d   : > { %v1120_v0 = vadd.f32 %v2171_v63, %v3037_v50  ;;  %2505 = vtanh.f32 %v1109_v62 }
 0x29e   : > { %v1111_v2 = vpop.f32.mrf.mxu0 }
 0x29f   : > { %v1112_v3 = vadd.f32 %v3037_v50, %v1111_v2  ;;  %2507 = vtanh.f32 %v1120_v0 }
 0x2a0   : > { %v2174_v4 = vpop.f32.mrf.mxu0 }
 0x2a1   : > { %2509 = vtanh.f32 %v1112_v3  ;;  %v1133_v12 = vadd.f32 %v2174_v4, %v3037_v50 }
 0x2a2   : > { %2511 = vtanh.f32 %v1117_v1  ;;  %v1124_v5 = vpop.f32.mrf.mxu0  ;;  %v2498_v7 = vpop.eup %2497 }
 0x2a3   : > { %v1125_v6 = vadd.f32 %v3037_v50, %v1124_v5 }
 0x2a4   : > { %v2175_v8 = vpop.f32.mrf.mxu0  ;;  %v2500_v9 = vpop.eup %2499 }
 0x2a5   : > { %v1136_v10 = vadd.f32 %v2175_v8, %v3037_v50  ;;  %2513 = vtanh.f32 %v1125_v6 }
 0x2a6   : > { %v2502_v11 = vpop.eup %2501  ;;  %v1127_v13 = vpop.f32.mrf.mxu0 }
 0x2a7   : > { %v2504_v15 = vpop.eup %2503  ;;  %v1128_v14 = vadd.f32 %v3037_v50, %v1127_v13  ;;  %v1251_v16 = vpack.c.bf16 %v2502_v11, %v2498_v7  ;;  %2515 = vtanh.f32 %v1136_v10 }
 0x2a8   : > { %v2178_v17 = vpop.f32.mrf.mxu0  ;;  %v1252_v18 = vpack.c.bf16 %v2500_v9, %v2504_v15 }
 0x2a9   : > { %2517 = vtanh.f32 %v1128_v14  ;;  %2212 = vmatprep.mubr.bf16.mxu1 %v1251_v16  ;;  %v1149_v26 = vadd.f32 %v2178_v17, %v3037_v50 }
 0x2aa   : > { %2519 = vtanh.f32 %v1133_v12  ;;  %v1140_v19 = vpop.f32.mrf.mxu0  ;;  %2213 = vmatmul.mubr.bf16.vlgmr.msra.gmra.mxu1 %v1252_v18  ;;  %v2506_v20 = vpop.eup %2505 }
 0x2ab   : > { %v1141_v21 = vadd.f32 %v3037_v50, %v1140_v19 }
 0x2ac   : > { %v2179_v22 = vpop.f32.mrf.mxu0  ;;  %v2508_v23 = vpop.eup %2507 }
 0x2ad   : > { %v1152_v24 = vadd.f32 %v2179_v22, %v3037_v50  ;;  %2521 = vtanh.f32 %v1141_v21 }
 0x2ae   : > { %v2510_v25 = vpop.eup %2509  ;;  %v1143_v27 = vpop.f32.mrf.mxu0 }
 0x2af   : > { %v2512_v28 = vpop.eup %2511  ;;  %v1144_v29 = vadd.f32 %v3037_v50, %v1143_v27  ;;  %v1253_v30 = vpack.c.bf16 %v2510_v25, %v2506_v20  ;;  %2523 = vtanh.f32 %v1152_v24 }
 0x2b0   : > { %v2182_v31 = vpop.f32.mrf.mxu0  ;;  %v1254_v32 = vpack.c.bf16 %v2508_v23, %v2512_v28 }
 0x2b1   : > { %2525 = vtanh.f32 %v1144_v29  ;;  %2216 = vmatprep.mubr.bf16.mxu1 %v1253_v30  ;;  %v1165_v40 = vadd.f32 %v2182_v31, %v3037_v50 }
 0x2b2   : > { %2527 = vtanh.f32 %v1149_v26  ;;  %v1156_v33 = vpop.f32.mrf.mxu0  ;;  %2217 = vmatmul.mubr.bf16.gmra.mxu1 %v1254_v32  ;;  %v2514_v35 = vpop.eup %2513 }
 0x2b3   : > { %v1157_v34 = vadd.f32 %v3037_v50, %v1156_v33 }
 0x2b4   : > { %v2183_v36 = vpop.f32.mrf.mxu0  ;;  %v2516_v37 = vpop.eup %2515 }
 0x2b5   : > { %v1168_v38 = vadd.f32 %v2183_v36, %v3037_v50  ;;  %2529 = vtanh.f32 %v1157_v34  ;;  %v2366_v36 = vld [vmem:[%s3251_s9 + $0x10] sm:$0xff]  }
 0x2b6   : > { %v2518_v39 = vpop.eup %2517  ;;  %v1159_v57 = vpop.f32.mrf.mxu0  ;;  %2254 = vmatprep.subr.bf16.mxu0 %v2366_v36 }
 0x2b7   : > { %v2520_v41 = vpop.eup %2519  ;;  %v1160_v42 = vadd.f32 %v3037_v50, %v1159_v57  ;;  %v1255_v43 = vpack.c.bf16 %v2518_v39, %v2514_v35  ;;  %2531 = vtanh.f32 %v1168_v38  ;;  %2255 = vmatpush3.bf16.msra.mxu0 %v2366_v36  ;;  %v2368_v38 = vld [vmem:[%s3251_s9] sm:$0xff]  }
 0x2b8   : > { %v2186_v44 = vpop.f32.mrf.mxu0  ;;  %v1256_v45 = vpack.c.bf16 %v2516_v37, %v2520_v41  ;;  %v2367_v37 = vld [vmem:[%s3251_s9 + $0x8] sm:$0xff]  }
 0x2b9   : > { %2533 = vtanh.f32 %v1160_v42  ;;  %2220 = vmatprep.mubr.bf16.mxu1 %v1255_v43  ;;  %v1181_v53 = vadd.f32 %v2186_v44, %v3037_v50  ;;  %2256 = vmatprep.subr.bf16.mxu0 %v2367_v37 }
 0x2ba   : > { %2535 = vtanh.f32 %v1165_v40  ;;  %v1172_v61 = vpop.f32.mrf.mxu0  ;;  %2221 = vmatmul.mubr.bf16.gmra.mxu1 %v1256_v45  ;;  %v2522_v47 = vpop.eup %2521  ;;  %v3083_v40 = vld [vmem:[%s3250_s8] ss:$0 sm:$0xff] }
 0x2bb   : > { %v1173_v46 = vadd.f32 %v3037_v50, %v1172_v61  ;;  %2257 = vmatpush3.bf16.msra.mxu0 %v2367_v37 }
 0x2bc   : > { %v2187_v48 = vpop.f32.mrf.mxu0  ;;  %v2524_v49 = vpop.eup %2523  ;;  %2258 = vmatprep.subr.bf16.mxu0 %v2368_v38 }
 0x2bd   : > { %v1184_v51 = vadd.f32 %v2187_v48, %v3037_v50  ;;  %2537 = vtanh.f32 %v1173_v46 }
 0x2be   : > { %v2526_v52 = vpop.eup %2525  ;;  %v1175_v54 = vpop.f32.mrf.mxu0 }
 0x2bf   : > { %v2528_v55 = vpop.eup %2527  ;;  %v1176_v56 = vadd.f32 %v3037_v50, %v1175_v54  ;;  %v1257_v58 = vpack.c.bf16 %v2526_v52, %v2522_v47  ;;  %2539 = vtanh.f32 %v1184_v51  ;;  %2259 = vmatpush3.bf16.msra.mxu0 %v2368_v38 }
 0x2c0   : > { %v2190_v59 = vpop.f32.mrf.mxu0  ;;  %v1258_v60 = vpack.c.bf16 %v2524_v49, %v2528_v55 }
 0x2c1   : > { %2541 = vtanh.f32 %v1176_v56  ;;  %2224 = vmatprep.mubr.bf16.mxu1 %v1257_v58  ;;  %v1197_v5 = vadd.f32 %v2190_v59, %v3037_v50 }
 0x2c2   : > { %2543 = vtanh.f32 %v1181_v53  ;;  %v1188_v62 = vpop.f32.mrf.mxu0  ;;  %2225 = vmatmul.mubr.bf16.gmra.mxu1 %v1258_v60  ;;  %v2530_v0 = vpop.eup %2529 }
 0x2c3   : > { %v1189_v63 = vadd.f32 %v3037_v50, %v1188_v62 }
 0x2c4   : > { %v2191_v1 = vpop.f32.mrf.mxu0  ;;  %v2532_v2 = vpop.eup %2531 }
 0x2c5   : > { %v1200_v3 = vadd.f32 %v2191_v1, %v3037_v50  ;;  %2545 = vtanh.f32 %v1189_v63 }
 0x2c6   : > { %v2534_v4 = vpop.eup %2533  ;;  %v1191_v6 = vpop.f32.mrf.mxu0 }
 0x2c7   : > { %v2536_v7 = vpop.eup %2535  ;;  %v1192_v8 = vadd.f32 %v3037_v50, %v1191_v6  ;;  %v1259_v9 = vpack.c.bf16 %v2534_v4, %v2530_v0  ;;  %2547 = vtanh.f32 %v1200_v3 }
 0x2c8   : > { %v2194_v10 = vpop.f32.mrf.mxu0  ;;  %v1260_v11 = vpack.c.bf16 %v2532_v2, %v2536_v7 }
 0x2c9   : > { %2549 = vtanh.f32 %v1192_v8  ;;  %2228 = vmatprep.mubr.bf16.mxu1 %v1259_v9  ;;  %v1213_v19 = vadd.f32 %v2194_v10, %v3037_v50 }
 0x2ca   : > { %2551 = vtanh.f32 %v1197_v5  ;;  %v1204_v12 = vpop.f32.mrf.mxu0  ;;  %2229 = vmatmul.mubr.bf16.gmra.mxu1 %v1260_v11  ;;  %v2538_v15 = vpop.eup %2537 }
 0x2cb   : > { %v1205_v13 = vadd.f32 %v3037_v50, %v1204_v12 }
 0x2cc   : > { %v2195_v14 = vpop.f32.mrf.mxu0  ;;  %v2540_v16 = vpop.eup %2539 }
 0x2cd   : > { %v1216_v17 = vadd.f32 %v2195_v14, %v3037_v50  ;;  %2553 = vtanh.f32 %v1205_v13 }
 0x2ce   : > { %v2542_v18 = vpop.eup %2541  ;;  %v1207_v21 = vpop.f32.mrf.mxu0 }
 0x2cf   : > { %v2544_v20 = vpop.eup %2543  ;;  %v1208_v22 = vadd.f32 %v3037_v50, %v1207_v21  ;;  %v1261_v23 = vpack.c.bf16 %v2542_v18, %v2538_v15  ;;  %2555 = vtanh.f32 %v1216_v17 }
 0x2d0   : > { %v1262_v24 = vpack.c.bf16 %v2540_v16, %v2544_v20 }
 0x2d1   : > { %2557 = vtanh.f32 %v1208_v22  ;;  %2232 = vmatprep.mubr.bf16.mxu1 %v1261_v23 }
 0x2d2   : > { %2559 = vtanh.f32 %v1213_v19  ;;  %2233 = vmatmul.mubr.bf16.gmra.mxu1 %v1262_v24  ;;  %v2546_v25 = vpop.eup %2545 }
 0x2d4   : > { %v2548_v26 = vpop.eup %2547 }
 0x2d6   : > { %v2550_v27 = vpop.eup %2549 }
 0x2d7   : > { %v2552_v28 = vpop.eup %2551  ;;  %v1263_v29 = vpack.c.bf16 %v2550_v27, %v2546_v25 }
 0x2d8   : > { %v1264_v30 = vpack.c.bf16 %v2548_v26, %v2552_v28 }
 0x2d9   : > { %2236 = vmatprep.mubr.bf16.mxu1 %v1263_v29 }
 0x2da   : > { %2237 = vmatmul.mubr.bf16.gmra.mxu1 %v1264_v30  ;;  %v2554_v31 = vpop.eup %2553 }
 0x2dc   : > { %v2556_v32 = vpop.eup %2555 }
 0x2de   : > { %v2558_v33 = vpop.eup %2557 }
 0x2df   : > { %v2560_v34 = vpop.eup %2559  ;;  %v1265_v50 = vpack.c.bf16 %v2558_v33, %v2554_v31 }
 0x2e0   : > { %v1266_v35 = vpack.c.bf16 %v2556_v32, %v2560_v34 }
 0x2e1   : > { %2240 = vmatprep.mubr.bf16.mxu1 %v1265_v50 }
 0x2e2   : > { %2241 = vmatmul.mubr.bf16.gmra.mxu1 %v1266_v35 }
 0x36a   : > { %v2214_v39 = vpop.f32.mrf.mxu1 }
 0x36b   : > { %v1381_v44 = vadd.f32 %v2214_v39, %v3083_v40 }
 0x36c   : > { %v1372_v57 = vpop.f32.mrf.mxu1 }
 0x36d   : > { %v1373_v41 = vadd.f32 %v3083_v40, %v1372_v57 }
 0x36e   : > { %v2215_v42 = vpop.f32.mrf.mxu1 }
 0x36f   : > { %v1384_v43 = vadd.f32 %v2215_v42, %v3083_v40  ;;  %2561 = vtanh.f32 %v1373_v41 }
 0x370   : > { %v1375_v45 = vpop.f32.mrf.mxu1 }
 0x371   : > { %v1376_v61 = vadd.f32 %v3083_v40, %v1375_v45  ;;  %2563 = vtanh.f32 %v1384_v43 }
 0x372   : > { %v2218_v46 = vpop.f32.mrf.mxu1 }
 0x373   : > { %2565 = vtanh.f32 %v1376_v61  ;;  %v1397_v52 = vadd.f32 %v2218_v46, %v3083_v40 }
 0x374   : > { %2567 = vtanh.f32 %v1381_v44  ;;  %v1388_v47 = vpop.f32.mrf.mxu1 }
 0x375   : > { %v1389_v48 = vadd.f32 %v3083_v40, %v1388_v47 }
 0x376   : > { %v2219_v49 = vpop.f32.mrf.mxu1 }
 0x377   : > { %v1400_v51 = vadd.f32 %v2219_v49, %v3083_v40  ;;  %2569 = vtanh.f32 %v1389_v48 }
 0x378   : > { %v1391_v53 = vpop.f32.mrf.mxu1 }
 0x379   : > { %v1392_v54 = vadd.f32 %v3083_v40, %v1391_v53  ;;  %2571 = vtanh.f32 %v1400_v51 }
 0x37a   : > { %v2222_v55 = vpop.f32.mrf.mxu1 }
 0x37b   : > { %2573 = vtanh.f32 %v1392_v54  ;;  %v1413_v1 = vadd.f32 %v2222_v55, %v3083_v40 }
 0x37c   : > { %2575 = vtanh.f32 %v1397_v52  ;;  %v1404_v56 = vpop.f32.mrf.mxu1  ;;  %v2562_v59 = vpop.eup %2561 }
 0x37d   : > { %v1405_v58 = vadd.f32 %v3083_v40, %v1404_v56 }
 0x37e   : > { %v2223_v60 = vpop.f32.mrf.mxu1  ;;  %v2564_v62 = vpop.eup %2563 }
 0x37f   : > { %v1416_v63 = vadd.f32 %v2223_v60, %v3083_v40  ;;  %2577 = vtanh.f32 %v1405_v58 }
 0x380   : > { %v2566_v0 = vpop.eup %2565  ;;  %v1407_v2 = vpop.f32.mrf.mxu1 }
 0x381   : > { %v2568_v3 = vpop.eup %2567  ;;  %v1408_v4 = vadd.f32 %v3083_v40, %v1407_v2  ;;  %v1531_v5 = vpack.c.bf16 %v2566_v0, %v2562_v59  ;;  %2579 = vtanh.f32 %v1416_v63 }
 0x382   : > { %v2226_v6 = vpop.f32.mrf.mxu1  ;;  %v1532_v7 = vpack.c.bf16 %v2564_v62, %v2568_v3 }
 0x383   : > { %2581 = vtanh.f32 %v1408_v4  ;;  %2260 = vmatprep.mubr.bf16.mxu0 %v1531_v5  ;;  %v1429_v14 = vadd.f32 %v2226_v6, %v3083_v40 }
 0x384   : > { %2583 = vtanh.f32 %v1413_v1  ;;  %v1420_v8 = vpop.f32.mrf.mxu1  ;;  %2261 = vmatmul.mubr.bf16.vlgmr.msra.gmra.mxu0 %v1532_v7  ;;  %v2570_v10 = vpop.eup %2569 }
 0x385   : > { %v1421_v9 = vadd.f32 %v3083_v40, %v1420_v8 }
 0x386   : > { %v2227_v11 = vpop.f32.mrf.mxu1  ;;  %v2572_v12 = vpop.eup %2571 }
 0x387   : > { %v1432_v13 = vadd.f32 %v2227_v11, %v3083_v40  ;;  %2585 = vtanh.f32 %v1421_v9 }
 0x388   : > { %v2574_v15 = vpop.eup %2573  ;;  %v1423_v16 = vpop.f32.mrf.mxu1 }
 0x389   : > { %v2576_v17 = vpop.eup %2575  ;;  %v1424_v18 = vadd.f32 %v3083_v40, %v1423_v16  ;;  %v1533_v19 = vpack.c.bf16 %v2574_v15, %v2570_v10  ;;  %2587 = vtanh.f32 %v1432_v13 }
 0x38a   : > { %v2230_v21 = vpop.f32.mrf.mxu1  ;;  %v1534_v20 = vpack.c.bf16 %v2572_v12, %v2576_v17 }
 0x38b   : > { %2589 = vtanh.f32 %v1424_v18  ;;  %2264 = vmatprep.mubr.bf16.mxu0 %v1533_v19  ;;  %v1445_v29 = vadd.f32 %v2230_v21, %v3083_v40 }
 0x38c   : > { %2591 = vtanh.f32 %v1429_v14  ;;  %v1436_v22 = vpop.f32.mrf.mxu1  ;;  %2265 = vmatmul.mubr.bf16.gmra.mxu0 %v1534_v20  ;;  %v2578_v24 = vpop.eup %2577 }
 0x38d   : > { %v1437_v23 = vadd.f32 %v3083_v40, %v1436_v22 }
 0x38e   : > { %v2231_v25 = vpop.f32.mrf.mxu1  ;;  %v2580_v26 = vpop.eup %2579 }
 0x38f   : > { %v1448_v27 = vadd.f32 %v2231_v25, %v3083_v40  ;;  %2593 = vtanh.f32 %v1437_v23  ;;  %v3123_v25 = vld [vmem:[%s3252_s10] ss:$0 sm:$0xff] }
 0x390   : > { %v2582_v28 = vpop.eup %2581  ;;  %v1439_v30 = vpop.f32.mrf.mxu1 }
 0x391   : > { %v2584_v31 = vpop.eup %2583  ;;  %v1440_v32 = vadd.f32 %v3083_v40, %v1439_v30  ;;  %v1535_v33 = vpack.c.bf16 %v2582_v28, %v2578_v24  ;;  %2595 = vtanh.f32 %v1448_v27 }
 0x392   : > { %v2234_v34 = vpop.f32.mrf.mxu1  ;;  %v1536_v50 = vpack.c.bf16 %v2580_v26, %v2584_v31 }
 0x393   : > { %2597 = vtanh.f32 %v1440_v32  ;;  %2268 = vmatprep.mubr.bf16.mxu0 %v1535_v33  ;;  %v1461_v42 = vadd.f32 %v2234_v34, %v3083_v40 }
 0x394   : > { %2599 = vtanh.f32 %v1445_v29  ;;  %v1452_v35 = vpop.f32.mrf.mxu1  ;;  %2269 = vmatmul.mubr.bf16.gmra.mxu0 %v1536_v50  ;;  %v2586_v37 = vpop.eup %2585 }
 0x395   : > { %v1453_v36 = vadd.f32 %v3083_v40, %v1452_v35 }
 0x396   : > { %v2235_v38 = vpop.f32.mrf.mxu1  ;;  %v2588_v39 = vpop.eup %2587 }
 0x397   : > { %v1464_v57 = vadd.f32 %v2235_v38, %v3083_v40  ;;  %2601 = vtanh.f32 %v1453_v36 }
 0x398   : > { %v2590_v41 = vpop.eup %2589  ;;  %v1455_v43 = vpop.f32.mrf.mxu1 }
 0x399   : > { %v2592_v44 = vpop.eup %2591  ;;  %v1456_v45 = vadd.f32 %v3083_v40, %v1455_v43  ;;  %v1537_v61 = vpack.c.bf16 %v2590_v41, %v2586_v37  ;;  %2603 = vtanh.f32 %v1464_v57 }
 0x39a   : > { %v2238_v46 = vpop.f32.mrf.mxu1  ;;  %v1538_v47 = vpack.c.bf16 %v2588_v39, %v2592_v44 }
 0x39b   : > { %2605 = vtanh.f32 %v1456_v45  ;;  %2272 = vmatprep.mubr.bf16.mxu0 %v1537_v61  ;;  %v1477_v56 = vadd.f32 %v2238_v46, %v3083_v40 }
 0x39c   : > { %2607 = vtanh.f32 %v1461_v42  ;;  %v1468_v48 = vpop.f32.mrf.mxu1  ;;  %2273 = vmatmul.mubr.bf16.gmra.mxu0 %v1538_v47  ;;  %v2594_v51 = vpop.eup %2593 }
 0x39d   : > { %v1469_v49 = vadd.f32 %v3083_v40, %v1468_v48 }
 0x39e   : > { %v2239_v52 = vpop.f32.mrf.mxu1  ;;  %v2596_v53 = vpop.eup %2595 }
 0x39f   : > { %v1480_v54 = vadd.f32 %v2239_v52, %v3083_v40  ;;  %2609 = vtanh.f32 %v1469_v49 }
 0x3a0   : > { %v2598_v55 = vpop.eup %2597  ;;  %v1471_v58 = vpop.f32.mrf.mxu1 }
 0x3a1   : > { %v2600_v59 = vpop.eup %2599  ;;  %v1472_v60 = vadd.f32 %v3083_v40, %v1471_v58  ;;  %v1539_v62 = vpack.c.bf16 %v2598_v55, %v2594_v51  ;;  %2611 = vtanh.f32 %v1480_v54 }
 0x3a2   : > { %v2242_v63 = vpop.f32.mrf.mxu1  ;;  %v1540_v0 = vpack.c.bf16 %v2596_v53, %v2600_v59 }
 0x3a3   : > { %2613 = vtanh.f32 %v1472_v60  ;;  %2276 = vmatprep.mubr.bf16.mxu0 %v1539_v62  ;;  %v1493_v8 = vadd.f32 %v2242_v63, %v3083_v40 }
 0x3a4   : > { %2615 = vtanh.f32 %v1477_v56  ;;  %v1484_v1 = vpop.f32.mrf.mxu1  ;;  %2277 = vmatmul.mubr.bf16.gmra.mxu0 %v1540_v0  ;;  %v2602_v3 = vpop.eup %2601 }
 0x3a5   : > { %v1485_v2 = vadd.f32 %v3083_v40, %v1484_v1 }
 0x3a6   : > { %v2243_v4 = vpop.f32.mrf.mxu1  ;;  %v2604_v5 = vpop.eup %2603 }
 0x3a7   : > { %v1496_v6 = vadd.f32 %v2243_v4, %v3083_v40  ;;  %2617 = vtanh.f32 %v1485_v2 }
 0x3a8   : > { %v2606_v7 = vpop.eup %2605  ;;  %v1487_v9 = vpop.f32.mrf.mxu1 }
 0x3a9   : > { %v2608_v10 = vpop.eup %2607  ;;  %v1488_v11 = vadd.f32 %v3083_v40, %v1487_v9  ;;  %v1541_v12 = vpack.c.bf16 %v2606_v7, %v2602_v3  ;;  %2619 = vtanh.f32 %v1496_v6 }
 0x3aa   : > { %v1542_v13 = vpack.c.bf16 %v2604_v5, %v2608_v10 }
 0x3ab   : > { %2621 = vtanh.f32 %v1488_v11  ;;  %2280 = vmatprep.mubr.bf16.mxu0 %v1541_v12 }
 0x3ac   : > { %2623 = vtanh.f32 %v1493_v8  ;;  %2281 = vmatmul.mubr.bf16.gmra.mxu0 %v1542_v13  ;;  %v2610_v15 = vpop.eup %2609 }
 0x3ae   : > { %v2612_v14 = vpop.eup %2611 }
 0x3b0   : > { %v2614_v16 = vpop.eup %2613 }
 0x3b1   : > { %v2616_v17 = vpop.eup %2615  ;;  %v1543_v18 = vpack.c.bf16 %v2614_v16, %v2610_v15 }
 0x3b2   : > { %v1544_v19 = vpack.c.bf16 %v2612_v14, %v2616_v17 }
 0x3b3   : > { %2284 = vmatprep.mubr.bf16.mxu0 %v1543_v18 }
 0x3b4   : > { %2285 = vmatmul.mubr.bf16.gmra.mxu0 %v1544_v19  ;;  %v2618_v21 = vpop.eup %2617 }
 0x3b6   : > { %v2620_v20 = vpop.eup %2619 }
 0x3b8   : > { %v2622_v40 = vpop.eup %2621 }
 0x3b9   : > { %v2624_v22 = vpop.eup %2623  ;;  %v1545_v23 = vpack.c.bf16 %v2622_v40, %v2618_v21 }
 0x3ba   : > { %v1546_v24 = vpack.c.bf16 %v2620_v20, %v2624_v22 }
 0x3bb   : > { %2288 = vmatprep.mubr.bf16.mxu0 %v1545_v23 }
 0x3bc   : > { %2289 = vmatmul.mubr.bf16.gmra.mxu0 %v1546_v24 }
 0x444   : > { %v2262_v26 = vpop.f32.mrf.mxu0 }
 0x445   : > { %v1661_v27 = vadd.f32 %v2262_v26, %v3123_v25 }
 0x446   : > { %v1652_v28 = vpop.f32.mrf.mxu0 }
 0x447   : > { %1781 = vst [vmem:[%s3126_s13 + $0x10] sm:$0xff] %v1661_v27  ;;  %v1653_v29 = vadd.f32 %v3123_v25, %v1652_v28 }
 0x448   : > { %v2263_v30 = vpop.f32.mrf.mxu0 }
 0x449   : > { %1779 = vst [vmem:[%s3126_s13] sm:$0xff] %v1653_v29  ;;  %v1664_v31 = vadd.f32 %v2263_v30, %v3123_v25 }
 0x44a   : > { %v1655_v32 = vpop.f32.mrf.mxu0 }
 0x44b   : > { %1782 = vst [vmem:[%s3126_s13 + $0x18] sm:$0xff] %v1664_v31  ;;  %v1656_v33 = vadd.f32 %v3123_v25, %v1655_v32 }
 0x44c   : > { %v2266_v34 = vpop.f32.mrf.mxu0 }
 0x44d   : > { %1780 = vst [vmem:[%s3126_s13 + $0x8] sm:$0xff] %v1656_v33  ;;  %v1677_v50 = vadd.f32 %v2266_v34, %v3123_v25 }
 0x44e   : > { %v1668_v35 = vpop.f32.mrf.mxu0 }
 0x44f   : > { %1785 = vst [vmem:[%s3126_s13 + $0x30] sm:$0xff] %v1677_v50  ;;  %v1669_v36 = vadd.f32 %v3123_v25, %v1668_v35 }
 0x450   : > { %v2267_v37 = vpop.f32.mrf.mxu0 }
 0x451   : > { %1783 = vst [vmem:[%s3126_s13 + $0x20] sm:$0xff] %v1669_v36  ;;  %v1680_v38 = vadd.f32 %v2267_v37, %v3123_v25 }
 0x452   : > { %v1671_v39 = vpop.f32.mrf.mxu0 }
 0x453   : > { %1786 = vst [vmem:[%s3126_s13 + $0x38] sm:$0xff] %v1680_v38  ;;  %v1672_v57 = vadd.f32 %v3123_v25, %v1671_v39 }
 0x454   : > { %v2270_v41 = vpop.f32.mrf.mxu0 }
 0x455   : > { %1784 = vst [vmem:[%s3126_s13 + $0x28] sm:$0xff] %v1672_v57  ;;  %v1693_v42 = vadd.f32 %v2270_v41, %v3123_v25 }
 0x456   : > { %v1684_v43 = vpop.f32.mrf.mxu0 }
 0x457   : > { %1789 = vst [vmem:[%s3126_s13 + $0x50] sm:$0xff] %v1693_v42  ;;  %v1685_v44 = vadd.f32 %v3123_v25, %v1684_v43 }
 0x458   : > { %v2271_v45 = vpop.f32.mrf.mxu0 }
 0x459   : > { %1787 = vst [vmem:[%s3126_s13 + $0x40] sm:$0xff] %v1685_v44  ;;  %v1696_v61 = vadd.f32 %v2271_v45, %v3123_v25 }
 0x45a   : > { %v1687_v46 = vpop.f32.mrf.mxu0 }
 0x45b   : > { %1790 = vst [vmem:[%s3126_s13 + $0x58] sm:$0xff] %v1696_v61  ;;  %v1688_v47 = vadd.f32 %v3123_v25, %v1687_v46 }
 0x45c   : > { %v2274_v48 = vpop.f32.mrf.mxu0 }
 0x45d   : > { %1788 = vst [vmem:[%s3126_s13 + $0x48] sm:$0xff] %v1688_v47  ;;  %v1709_v49 = vadd.f32 %v2274_v48, %v3123_v25 }
 0x45e   : > { %v1700_v51 = vpop.f32.mrf.mxu0 }
 0x45f   : > { %1793 = vst [vmem:[%s3126_s13 + $0x70] sm:$0xff] %v1709_v49  ;;  %v1701_v52 = vadd.f32 %v3123_v25, %v1700_v51 }
 0x460   : > { %v2275_v53 = vpop.f32.mrf.mxu0 }
 0x461   : > { %1791 = vst [vmem:[%s3126_s13 + $0x60] sm:$0xff] %v1701_v52  ;;  %v1712_v54 = vadd.f32 %v2275_v53, %v3123_v25 }
 0x462   : > { %v1703_v55 = vpop.f32.mrf.mxu0 }
 0x463   : > { %1794 = vst [vmem:[%s3126_s13 + $0x78] sm:$0xff] %v1712_v54  ;;  %v1704_v56 = vadd.f32 %v3123_v25, %v1703_v55 }
 0x464   : > { %v2278_v58 = vpop.f32.mrf.mxu0 }
 0x465   : > { %1792 = vst [vmem:[%s3126_s13 + $0x68] sm:$0xff] %v1704_v56  ;;  %v1725_v59 = vadd.f32 %v2278_v58, %v3123_v25 }
 0x466   : > { %v1716_v60 = vpop.f32.mrf.mxu0 }
 0x467   : > { %1797 = vst [vmem:[%s3126_s13 + $0x90] sm:$0xff] %v1725_v59  ;;  %v1717_v62 = vadd.f32 %v3123_v25, %v1716_v60 }
 0x468   : > { %v2279_v63 = vpop.f32.mrf.mxu0 }
 0x469   : > { %1795 = vst [vmem:[%s3126_s13 + $0x80] sm:$0xff] %v1717_v62  ;;  %v1728_v0 = vadd.f32 %v2279_v63, %v3123_v25 }
 0x46a   : > { %v1719_v1 = vpop.f32.mrf.mxu0 }
 0x46b   : > { %1798 = vst [vmem:[%s3126_s13 + $0x98] sm:$0xff] %v1728_v0  ;;  %v1720_v2 = vadd.f32 %v3123_v25, %v1719_v1 }
 0x46c   : > { %v2282_v3 = vpop.f32.mrf.mxu0 }
 0x46d   : > { %1796 = vst [vmem:[%s3126_s13 + $0x88] sm:$0xff] %v1720_v2  ;;  %v1741_v4 = vadd.f32 %v2282_v3, %v3123_v25 }
 0x46e   : > { %v1732_v5 = vpop.f32.mrf.mxu0 }
 0x46f   : > { %1801 = vst [vmem:[%s3126_s13 + $0xb0] sm:$0xff] %v1741_v4  ;;  %v1733_v6 = vadd.f32 %v3123_v25, %v1732_v5 }
 0x470   : > { %v2283_v7 = vpop.f32.mrf.mxu0 }
 0x471   : > { %1799 = vst [vmem:[%s3126_s13 + $0xa0] sm:$0xff] %v1733_v6  ;;  %v1744_v8 = vadd.f32 %v2283_v7, %v3123_v25 }
 0x472   : > { %v1735_v9 = vpop.f32.mrf.mxu0 }
 0x473   : > { %1802 = vst [vmem:[%s3126_s13 + $0xb8] sm:$0xff] %v1744_v8  ;;  %v1736_v10 = vadd.f32 %v3123_v25, %v1735_v9 }
 0x474   : > { %v2286_v11 = vpop.f32.mrf.mxu0 }
 0x475   : > { %1800 = vst [vmem:[%s3126_s13 + $0xa8] sm:$0xff] %v1736_v10  ;;  %v1757_v12 = vadd.f32 %v2286_v11, %v3123_v25 }
 0x476   : > { %v1748_v13 = vpop.f32.mrf.mxu0 }
 0x477   : > { %1805 = vst [vmem:[%s3126_s13 + $0xd0] sm:$0xff] %v1757_v12  ;;  %v1749_v15 = vadd.f32 %v3123_v25, %v1748_v13 }
 0x478   : > { %v2287_v14 = vpop.f32.mrf.mxu0 }
 0x479   : > { %1803 = vst [vmem:[%s3126_s13 + $0xc0] sm:$0xff] %v1749_v15  ;;  %v1760_v16 = vadd.f32 %v2287_v14, %v3123_v25 }
 0x47a   : > { %v1751_v17 = vpop.f32.mrf.mxu0 }
 0x47b   : > { %1806 = vst [vmem:[%s3126_s13 + $0xd8] sm:$0xff] %v1760_v16  ;;  %v1752_v18 = vadd.f32 %v3123_v25, %v1751_v17 }
 0x47c   : > { %v2290_v19 = vpop.f32.mrf.mxu0 }
 0x47d   : > { %1804 = vst [vmem:[%s3126_s13 + $0xc8] sm:$0xff] %v1752_v18  ;;  %v1773_v21 = vadd.f32 %v2290_v19, %v3123_v25 }
 0x47e   : > { %v1764_v20 = vpop.f32.mrf.mxu0 }
 0x47f   : > { %1809 = vst [vmem:[%s3126_s13 + $0xf0] sm:$0xff] %v1773_v21  ;;  %v1765_v40 = vadd.f32 %v3123_v25, %v1764_v20 }
 0x480   : > { %v2291_v22 = vpop.f32.mrf.mxu0 }
 0x481   : > { %1807 = vst [vmem:[%s3126_s13 + $0xe0] sm:$0xff] %v1765_v40  ;;  %v1776_v23 = vadd.f32 %v2291_v22, %v3123_v25 }
 0x482   : > { %v1767_v24 = vpop.f32.mrf.mxu0 }
 0x483   : > { %1810 = vst [vmem:[%s3126_s13 + $0xf8] sm:$0xff] %v1776_v23  ;;  %v1768_v26 = vadd.f32 %v3123_v25, %v1767_v24 }
 0x485   : > { %1808 = vst [vmem:[%s3126_s13 + $0xe8] sm:$0xff] %v1768_v26 }
 0x486   : > { %2638 = shalt.err (!%p2635_p3)
}
 0x487   : > { %s2639_s25 = scalar_lea.hbm %s3193_s24, 4096  ;;  %s2643_s22 = scalar_lea.hbm %s3253_s11, 16384 }
 0x488   : > { %p2640_p4 = scmp.ne.s32.totalorder %s3193_s24, %s2639_s25  ;;  %p2644_p9 = scmp.lt.s32.totalorder %s3193_s24, %s3253_s11 }
 0x489   : > { %p2645_p10 = scmp.lt.s32.totalorder %s2643_s22, %s2639_s25 }
 0x48a   : > { %p2641_p7 = pnand %p2640_p4, %p2788_p5 }
 0x48b   : > { %p2646_p11 = por %p2645_p10, %p2644_p9 }
 0x48c   : > { %p2642_p8 = pneg %p2641_p7 }
 0x48e   : > { %p2647_p12 = pnand %p2646_p11, %p2642_p8 }
 0x490   : > { %2650 = shalt.err (!%p2647_p12)
}
 0x491   : > { %s2688_s29 = smov 128   ;;  %s2689_s12 = smov 8  }
 0x492   : > { %2296 = dma.vmem_to_hbm [thread:$0]  (%p2788_p5), %s3195_s15, 4096, %s3193_s24, %s3202_s21, %s2688_s29, %s2688_s29, %s2689_s12  }
 0x493 PF: > { %p2302_p13 = scmp.ge.s32.totalorder %s2685_s20, 2  ;;  %s1840_s14 = sand.u32 1, %s2673_s17  }
 0x494   : > { %s1841_s0 = scalar_lea.sflag [#allocation3], %s1840_s14 }
 0x495   : > { %p2299_p0 = pnand %p2302_p13, %p2792_p6 }
 0x497   : > { %p2300_p1 = pneg %p2299_p0 }
 0x499   : > { %2668 = dma.done.wait (%p2300_p1), %s1841_s0, 4096  }
 0x49a   : > { %2670 = vsyncadd (%p2300_p1), %s1841_s0, 4294963200  ;;  %p21_p2 = scmp.ge.s32.totalorder %s2775_s23, 6   ;;  %s3258_s17 = smov %s2677_s18 }
 0x49b   : > { %s3259_s18 = smov %s2681_s19  ;;  %s3260_s19 = smov %s2786_s26 }
 0x49c   : > { %s3261_s20 = smov %s2775_s23  ;;  %23 = sbr.rel (!%p21_p2) target bundleno = 5 (0x5), region = 99 }
 0x4a1   :  { %1846 = vsyncpa [#allocation3], 1 }
 0x4a2   :  { %1848 = vsyncpa [#allocation3 + $0x1], 1 }

</bundles_post_ra>
